<compile_context>
chip_gen: v6e
topology: v6e:2x2x1
jax: 0.10.0
libtpu: 0.0.40
codegen_flags: <defaults>
</compile_context>

<pallas_src>
import functools

import jax
import jax.numpy as jnp
import numpy as np
from jax.experimental import pallas as pl
from jax.experimental.pallas import tpu as pltpu

EXPANSION = 4
BN_EPS = 1e-5


def _bottleneck_kernel(*refs, downsample, has_halo):
    it = iter(refs)
    x_ref = next(it)
    xlast_ref = next(it) if has_halo else None
    xfirst_ref = next(it) if has_halo else None
    w1_ref, b1_ref = next(it), next(it)
    w2_ref, b2_ref = next(it), next(it)
    w3_ref, b3_ref = next(it), next(it)
    if downsample:
        w4_ref, b4_ref = next(it), next(it)
    o_ref = next(it)
    acc_ref = next(it)

    x = x_ref[0]                                     # (TL, Cin) bf16
    tl_rows = x.shape[0]
    w1 = w1_ref[...]                                 # (Cin, Cmid) bf16, BN scale folded in
    b1 = b1_ref[...]                                 # (1, Cmid)   f32

    def conv1_bn_relu(inp):
        h = jnp.dot(inp, w1, preferred_element_type=jnp.float32)
        return jnp.maximum(h + b1, 0.0)              # f32

    # Residual path first, into the f32 VMEM accumulator (only one (TL, Cout) f32
    # temporary is kept live through the epilogue).
    if downsample:
        acc_ref[...] = (jnp.dot(x, w4_ref[...], preferred_element_type=jnp.float32)
                        + b4_ref[...])
    else:
        acc_ref[...] = x.astype(jnp.float32)

    # conv1 (k=1) + bn1 + relu on this L-tile.
    h1 = conv1_bn_relu(x)                            # (TL, Cmid) f32
    cmid = h1.shape[1]

    # O(1) halo rows of h1 just outside this tile: the BlockSpecs deliver exactly
    # one neighbour row each (index clamped at the sequence edges), and the edge
    # contribution is zeroed to match conv2's zero padding of the bn1/ReLU output.
    if has_halo:
        l = pl.program_id(1)
        nl = pl.num_programs(1)
        h1_left = jnp.where(l == 0, 0.0, conv1_bn_relu(xlast_ref[0, 0]))      # (1, Cmid)
        h1_right = jnp.where(l == nl - 1, 0.0, conv1_bn_relu(xfirst_ref[0, 0]))
    else:
        h1_left = jnp.zeros((1, cmid), jnp.float32)
        h1_right = jnp.zeros((1, cmid), jnp.float32)

    # conv2 (k=3, stride=1, padding=1) + bn2 + relu as ONE wide-K MXU matmul:
    # build [h1[l-1] | h1[l] | h1[l+1]] with XLU rolls + one-row edge fixups.
    rows = jax.lax.broadcasted_iota(jnp.int32, (tl_rows, 1), 0)
    h1_prev = jnp.where(rows == 0, h1_left, pltpu.roll(h1, shift=1, axis=0))
    h1_next = jnp.where(rows == tl_rows - 1, h1_right,
                        pltpu.roll(h1, shift=tl_rows - 1, axis=0))
    p = jnp.concatenate([h1_prev, h1, h1_next], axis=1).astype(jnp.bfloat16)

    h2 = jnp.dot(p, w2_ref[...], preferred_element_type=jnp.float32) + b2_ref[...]
    h2 = jnp.maximum(h2, 0.0)                        # (TL, Cmid) f32

    # conv3 (k=1) + bn3 accumulated onto the residual; final ReLU + bf16 cast.
    acc_ref[...] = acc_ref[...] + (
        jnp.dot(h2.astype(jnp.bfloat16), w3_ref[...],
                preferred_element_type=jnp.float32) + b3_ref[...])
    o_ref[0] = jnp.maximum(acc_ref[...], 0.0).astype(o_ref.dtype)


def _vmem_capacity_bytes():
    """Physical VMEM of the local TPU; conservative (v7x, 64 MiB) fallback if unknown."""
    try:
        cap = getattr(pltpu.get_tpu_info(), "vmem_capacity_bytes", None)
        if cap:
            return int(cap)
    except Exception:
        pass
    return 64 * 1024 * 1024


def _choose_tile_l(L, B, Cin, Cmid, Cout, downsample, vmem_limit, vmem_capacity):
    """Largest L-tile (multiple of 8, dividing L) that fits the per-tile VMEM budget."""
    # Worst-case (double-buffered) bf16 weight residency + slack for biases/sidecars.
    weight_bytes = 2 * 2 * (Cin * Cmid + 3 * Cmid * Cmid + Cmid * Cout
                            + (Cin * Cout if downsample else 0))
    fixed = weight_bytes + (2 << 20)
    per_row = (2 * 2 * Cin        # x tile, double-buffered bf16
               + 2 * 2 * Cout     # out tile, double-buffered bf16
               + 4 * Cmid         # h1, f32
               + 2 * 3 * Cmid     # stacked conv2 input, bf16
               + 4 * Cmid         # h2, f32
               + 4 * Cout         # residual/conv3 accumulator, f32
               + 4 * Cout)        # conv3 MXU result headroom, f32
    # 128 MiB parts (v5e/v6e) can afford 1024-row tiles; 64 MiB (v7x) caps at 512.
    tl_cap = 1024 if vmem_capacity > (64 << 20) else 512
    max_tl = int(max(8, min(tl_cap, (vmem_limit - fixed) // per_row)))
    if L <= max_tl:
        return L
    cands = [t for t in range(8, max_tl + 1, 8) if L % t == 0]
    if not cands:
        raise ValueError(
            f"L={L} has no multiple-of-8 divisor <= {max_tl}; pad L upstream "
            "(in-kernel padding of the length axis is not implemented).")
    if B == 1:
        # v7x has 2 TensorCores: prefer an even number of L-tiles so both get work.
        even = [t for t in cands if (L // t) % 2 == 0]
        if even:
            return max(even)
    return max(cands)


def bottleneck_forward(x_blc, params, *, stride=1, tile_l=None,
                       out_dtype=jnp.bfloat16):
    """x_blc: (B, L, Cin) channels-last. Returns (B, L, Cout) in `out_dtype`."""
    assert stride == 1, "TODO(synk): stride > 1 not supported in this kernel"
    B, L, Cin = x_blc.shape
    downsample = "w4" in params
    Cmid = params["w1"].shape[1]
    Cout = params["w3"].shape[1]
    assert params["w1"].shape[0] == Cin
    if not downsample:
        assert Cin == Cout, "identity residual requires Cin == expansion*out_channels"

    # Keep activations bf16 across blocks: this is a no-op when callers already do.
    x = x_blc if x_blc.dtype == jnp.bfloat16 else x_blc.astype(jnp.bfloat16)

    vmem_capacity = _vmem_capacity_bytes()
    vmem_limit = min(96 * 1024 * 1024, (3 * vmem_capacity) // 4)

    if tile_l is None:
        tile_l = _choose_tile_l(L, B, Cin, Cmid, Cout, downsample,
                                vmem_limit, vmem_capacity)
    assert L % tile_l == 0, "tile_l must divide L"
    assert tile_l == L or tile_l % 8 == 0, "tile_l must be a multiple of 8 (or == L)"
    nl = L // tile_l
    has_halo = nl > 1

    kernel = functools.partial(_bottleneck_kernel, downsample=downsample,
                               has_halo=has_halo)

    args = [x]
    if has_halo:
        # One-row sidecars: last / first row of every L-tile (the halo sources).
        x_last = x[:, tile_l - 1::tile_l, :].reshape(B, nl, 1, Cin)
        x_first = x[:, ::tile_l, :].reshape(B, nl, 1, Cin)
        args += [x_last, x_first]
    args += [params["w1"], params["b1"], params["w2s"], params["b2"],
             params["w3"], params["b3"]]
    if downsample:
        args += [params["w4"], params["b4"]]

    def build_in_specs(weight_mode):
        def wspec(a):
            nd = a.ndim

            def idx_map(b, l):
                return (0,) * nd

            if weight_mode is None:
                return pl.BlockSpec(a.shape, idx_map)
            return pl.BlockSpec(a.shape, idx_map, pipeline_mode=weight_mode)

        specs = [pl.BlockSpec((1, tile_l, Cin), lambda b, l: (b, l, 0))]
        if has_halo:
            specs += [
                pl.BlockSpec((1, 1, 1, Cin),
                             lambda b, l: (b, jnp.maximum(l - 1, 0), 0, 0)),
                pl.BlockSpec((1, 1, 1, Cin),
                             lambda b, l: (b, jnp.minimum(l + 1, nl - 1), 0, 0)),
            ]
        specs += [wspec(params["w1"]), wspec(params["b1"]),
                  wspec(params["w2s"]), wspec(params["b2"]),
                  wspec(params["w3"]), wspec(params["b3"])]
        if downsample:
            specs += [wspec(params["w4"]), wspec(params["b4"])]
        return specs

    def run(weight_mode):
        return pl.pallas_call(
            kernel,
            out_shape=jax.ShapeDtypeStruct((B, L, Cout), out_dtype),
            grid=(B, nl),
            in_specs=build_in_specs(weight_mode),
            out_specs=pl.BlockSpec((1, tile_l, Cout), lambda b, l: (b, l, 0)),
            scratch_shapes=[pltpu.VMEM((tile_l, Cout), jnp.float32)],
            compiler_params=pltpu.CompilerParams(
                dimension_semantics=("parallel", "parallel"),
                vmem_limit_bytes=vmem_limit),
        )(*args)

    try:
        # Constant-index weight/bias blocks: single-buffer to halve VMEM residency
        # (the difference between fitting big L-tiles in v7x's 64 MiB or not).
        return run(pl.Buffered(1))
    except Exception:
        # TODO(synk): drop this fallback once Buffered(1) is supported everywhere.
        return run(None)


def init_params(key, in_channels, out_channels):
    """Deterministic synthetic parameters. Eval-mode BatchNorm is folded: the
    per-channel scale is multiplied into the conv weights (in f32, before the bf16
    cast); only the per-channel bias survives as a separate f32 parameter."""
    cmid = out_channels
    cout = out_channels * EXPANSION
    ks = jax.random.split(key, 20)

    def bn_fold(kg, kb, km, kv, c):
        gamma = 1.0 + 0.1 * jax.random.normal(kg, (c,), jnp.float32)
        beta = 0.1 * jax.random.normal(kb, (c,), jnp.float32)
        mean = 0.1 * jax.random.normal(km, (c,), jnp.float32)
        var = jax.random.uniform(kv, (c,), jnp.float32, minval=0.5, maxval=1.5)
        scale = gamma * jax.lax.rsqrt(var + BN_EPS)
        bias = beta - mean * scale
        return scale, bias

    # Torch-layout conv weights (Cout, Cin, K), converted to matmul layout.
    w1_t = 0.2 * jax.random.normal(ks[0], (cmid, in_channels, 1), jnp.float32)
    w2_t = 0.2 * jax.random.normal(ks[1], (cmid, cmid, 3), jnp.float32)
    w3_t = 0.2 * jax.random.normal(ks[2], (cout, cmid, 1), jnp.float32)
    w4_t = 0.2 * jax.random.normal(ks[3], (cout, in_channels, 1), jnp.float32)

    s1, b1 = bn_fold(ks[4], ks[5], ks[6], ks[7], cmid)
    s2, b2 = bn_fold(ks[8], ks[9], ks[10], ks[11], cmid)
    s3, b3 = bn_fold(ks[12], ks[13], ks[14], ks[15], cout)

    # Matmul layouts with the BN scale folded into the output columns (f32 fold).
    w1 = jnp.transpose(w1_t[:, :, 0]) * s1[None, :]                             # (Cin, Cmid)
    w2s = (jnp.transpose(w2_t, (2, 1, 0)).reshape(3 * cmid, cmid) * s2[None, :])  # (3*Cmid, Cmid), taps [k=0;k=1;k=2]
    w3 = jnp.transpose(w3_t[:, :, 0]) * s3[None, :]                             # (Cmid, Cout)

    params = {
        "w1": w1.astype(jnp.bfloat16),
        "w2s": w2s.astype(jnp.bfloat16),
        "w3": w3.astype(jnp.bfloat16),
        "b1": b1.reshape(1, cmid),
        "b2": b2.reshape(1, cmid),
        "b3": b3.reshape(1, cout),
    }
    if in_channels != cout:   # stride == 1, so downsample iff channel mismatch
        s4, b4 = bn_fold(ks[16], ks[17], ks[18], ks[19], cout)
        params["w4"] = (jnp.transpose(w4_t[:, :, 0]) * s4[None, :]).astype(jnp.bfloat16)  # (Cin, Cout)
        params["b4"] = b4.reshape(1, cout)
    return params


def reference(x, params):
    """Plain-JAX eval-mode reference (channels-last), mimicking the kernel's bf16 casts."""
    f32 = lambda a: a.astype(jnp.float32)
    bf = lambda a: a.astype(jnp.bfloat16).astype(jnp.float32)
    xb = f32(x)   # x is already bf16-rounded
    h1 = jnp.maximum(jnp.einsum("blc,cd->bld", xb, f32(params["w1"])) + params["b1"], 0.0)
    h1b = bf(h1)
    zero = jnp.zeros_like(h1b[:, :1])
    h1_prev = jnp.concatenate([zero, h1b[:, :-1]], axis=1)
    h1_next = jnp.concatenate([h1b[:, 1:], zero], axis=1)
    p = jnp.concatenate([h1_prev, h1b, h1_next], axis=2)
    h2 = jnp.maximum(jnp.einsum("blc,cd->bld", p, f32(params["w2s"])) + params["b2"], 0.0)
    h3 = jnp.einsum("blc,cd->bld", bf(h2), f32(params["w3"])) + params["b3"]
    if "w4" in params:
        res = jnp.einsum("blc,cd->bld", xb, f32(params["w4"])) + params["b4"]
    else:
        res = xb
    return jnp.maximum(h3 + res, 0.0)


if __name__ == "__main__":
    key = jax.random.PRNGKey(0)
    k1, k2, k3, k4 = jax.random.split(key, 4)

    # Config A: projection residual (downsample), several L-tiles -> halo/roll path.
    B, Cin, out_ch, L = 2, 16, 8, 32
    x = jax.random.normal(k1, (B, L, Cin), jnp.float32).astype(jnp.bfloat16)
    params = init_params(k2, Cin, out_ch)
    y = jax.block_until_ready(bottleneck_forward(x, params, tile_l=8))
    y_ref = reference(x, params)
    np.testing.assert_allclose(np.asarray(y.astype(jnp.float32)), np.asarray(y_ref),
                               rtol=2e-2, atol=2e-2)

    # Config B: identity residual (Cin == expansion*out_channels), single L-tile
    # (exercises the static no-halo path and automatic tile selection).
    B2, Cin2, out_ch2, L2 = 2, 32, 8, 24
    x2 = jax.random.normal(k3, (B2, L2, Cin2), jnp.float32).astype(jnp.bfloat16)
    params2 = init_params(k4, Cin2, out_ch2)
    y2 = jax.block_until_ready(bottleneck_forward(x2, params2))
    y2_ref = reference(x2, params2)
    np.testing.assert_allclose(np.asarray(y2.astype(jnp.float32)), np.asarray(y2_ref),
                               rtol=2e-2, atol=2e-2)

    print("KERNEL_OK")
</pallas_src>

<mosaic_0001>
module attributes {stable_mosaic.version = 11 : i64} {
  func.func @_bottleneck_kernel(%arg0: i32, %arg1: i32, %arg2: memref<1x8x16xbf16, #tpu.memory_space<vmem>>, %arg3: memref<1x1x1x16xbf16, #tpu.memory_space<vmem>>, %arg4: memref<1x1x1x16xbf16, #tpu.memory_space<vmem>>, %arg5: memref<16x8xbf16, #tpu.memory_space<vmem>>, %arg6: memref<1x8xf32, #tpu.memory_space<vmem>>, %arg7: memref<24x8xbf16, #tpu.memory_space<vmem>>, %arg8: memref<1x8xf32, #tpu.memory_space<vmem>>, %arg9: memref<8x32xbf16, #tpu.memory_space<vmem>>, %arg10: memref<1x32xf32, #tpu.memory_space<vmem>>, %arg11: memref<16x32xbf16, #tpu.memory_space<vmem>>, %arg12: memref<1x32xf32, #tpu.memory_space<vmem>>, %arg13: memref<1x8x32xbf16, #tpu.memory_space<vmem>>, %arg14: memref<8x32xf32, #tpu.memory_space<vmem>>) attributes {dimension_semantics = [#tpu.dimension_semantics<parallel>, #tpu.dimension_semantics<parallel>], iteration_bounds = array<i64: 2, 4>, scalar_prefetch = 0 : i64, scratch_operands = 1 : i64, tpu.core_type = #tpu.core_type<tc>, window_params = [{transform_indices = @transform_0, window_bounds = array<i64: 1, 8, 16>}, {transform_indices = @transform_1, window_bounds = array<i64: 1, 1, 1, 16>}, {transform_indices = @transform_2, window_bounds = array<i64: 1, 1, 1, 16>}, {pipeline_mode = #tpu.pipeline_mode<synchronous>, transform_indices = @transform_3, window_bounds = array<i64: 16, 8>}, {pipeline_mode = #tpu.pipeline_mode<synchronous>, transform_indices = @transform_4, window_bounds = array<i64: 1, 8>}, {pipeline_mode = #tpu.pipeline_mode<synchronous>, transform_indices = @transform_5, window_bounds = array<i64: 24, 8>}, {pipeline_mode = #tpu.pipeline_mode<synchronous>, transform_indices = @transform_6, window_bounds = array<i64: 1, 8>}, {pipeline_mode = #tpu.pipeline_mode<synchronous>, transform_indices = @transform_7, window_bounds = array<i64: 8, 32>}, {pipeline_mode = #tpu.pipeline_mode<synchronous>, transform_indices = @transform_8, window_bounds = array<i64: 1, 32>}, {pipeline_mode = #tpu.pipeline_mode<synchronous>, transform_indices = @transform_9, window_bounds = array<i64: 16, 32>}, {pipeline_mode = #tpu.pipeline_mode<synchronous>, transform_indices = @transform_10, window_bounds = array<i64: 1, 32>}, {transform_indices = @transform_11, window_bounds = array<i64: 1, 8, 32>}]} {
    %c0 = arith.constant 0 : index
    %c0_0 = arith.constant 0 : index
    %c0_1 = arith.constant 0 : index
    %0 = vector.load %arg2[%c0, %c0_0, %c0_1] : memref<1x8x16xbf16, #tpu.memory_space<vmem>>, vector<1x8x16xbf16>
    %1 = vector.shape_cast %0 : vector<1x8x16xbf16> to vector<8x16xbf16>
    %c0_2 = arith.constant 0 : index
    %c0_3 = arith.constant 0 : index
    %2 = vector.load %arg5[%c0_2, %c0_3] : memref<16x8xbf16, #tpu.memory_space<vmem>>, vector<16x8xbf16>
    %c0_4 = arith.constant 0 : index
    %c0_5 = arith.constant 0 : index
    %3 = vector.load %arg6[%c0_4, %c0_5] : memref<1x8xf32, #tpu.memory_space<vmem>>, vector<1x8xf32>
    %c0_6 = arith.constant 0 : index
    %c0_7 = arith.constant 0 : index
    %4 = vector.load %arg11[%c0_6, %c0_7] : memref<16x32xbf16, #tpu.memory_space<vmem>>, vector<16x32xbf16>
    %cst = arith.constant dense<0.000000e+00> : vector<8x32xf32>
    %5 = tpu.matmul %1, %4, %cst {dimension_numbers = #tpu.dot_dimension_numbers<[1], [0], [0], [1], [0, 0, 1, 1], [], []>} : vector<8x16xbf16>, vector<16x32xbf16>, vector<8x32xf32> -> vector<8x32xf32>
    %c0_8 = arith.constant 0 : index
    %c0_9 = arith.constant 0 : index
    %6 = vector.load %arg12[%c0_8, %c0_9] : memref<1x32xf32, #tpu.memory_space<vmem>>, vector<1x32xf32>
    %7 = vector.broadcast %6 : vector<1x32xf32> to vector<8x32xf32>
    %8 = arith.addf %5, %7 : vector<8x32xf32>
    %c0_10 = arith.constant 0 : index
    %c0_11 = arith.constant 0 : index
    %9 = vector.load %arg14[%c0_10, %c0_11] : memref<8x32xf32, #tpu.memory_space<vmem>>, vector<8x32xf32>
    tpu.vector_store %arg14[%c0_10, %c0_11], %8 {strides = array<i32>} : memref<8x32xf32, #tpu.memory_space<vmem>>, vector<8x32xf32>,
    %cst_12 = arith.constant dense<0.000000e+00> : vector<8x8xf32>
    %10 = tpu.matmul %1, %2, %cst_12 {dimension_numbers = #tpu.dot_dimension_numbers<[1], [0], [0], [1], [0, 0, 1, 1], [], []>} : vector<8x16xbf16>, vector<16x8xbf16>, vector<8x8xf32> -> vector<8x8xf32>
    %11 = vector.broadcast %3 : vector<1x8xf32> to vector<8x8xf32>
    %12 = arith.addf %10, %11 : vector<8x8xf32>
    %cst_13 = arith.constant 0.000000e+00 : f32
    %13 = vector.broadcast %cst_13 : f32 to vector<8x8xf32>
    %14 = arith.maximumf %12, %13 : vector<8x8xf32>
    %c0_i32 = arith.constant 0 : i32
    %15 = arith.cmpi eq, %arg1, %c0_i32 : i32
    %c0_14 = arith.constant 0 : index
    %c0_15 = arith.constant 0 : index
    %c0_16 = arith.constant 0 : index
    %c0_17 = arith.constant 0 : index
    %16 = vector.load %arg3[%c0_14, %c0_15, %c0_16, %c0_17] : memref<1x1x1x16xbf16, #tpu.memory_space<vmem>>, vector<1x1x1x16xbf16>
    %17 = vector.shape_cast %16 : vector<1x1x1x16xbf16> to vector<1x16xbf16>
    %cst_18 = arith.constant dense<0.000000e+00> : vector<1x8xf32>
    %18 = tpu.matmul %17, %2, %cst_18 {dimension_numbers = #tpu.dot_dimension_numbers<[1], [0], [0], [1], [0, 0, 1, 1], [], []>} : vector<1x16xbf16>, vector<16x8xbf16>, vector<1x8xf32> -> vector<1x8xf32>
    %19 = arith.addf %18, %3 : vector<1x8xf32>
    %cst_19 = arith.constant 0.000000e+00 : f32
    %20 = vector.broadcast %cst_19 : f32 to vector<1x8xf32>
    %21 = arith.maximumf %19, %20 : vector<1x8xf32>
    %cst_20 = arith.constant 0.000000e+00 : f32
    %22 = vector.broadcast %cst_20 : f32 to vector<1x8xf32>
    %23 = arith.select %15, %22, %21 : vector<1x8xf32>
    %c3_i32 = arith.constant 3 : i32
    %24 = arith.cmpi eq, %arg1, %c3_i32 : i32
    %c0_21 = arith.constant 0 : index
    %c0_22 = arith.constant 0 : index
    %c0_23 = arith.constant 0 : index
    %c0_24 = arith.constant 0 : index
    %25 = vector.load %arg4[%c0_21, %c0_22, %c0_23, %c0_24] : memref<1x1x1x16xbf16, #tpu.memory_space<vmem>>, vector<1x1x1x16xbf16>
    %26 = vector.shape_cast %25 : vector<1x1x1x16xbf16> to vector<1x16xbf16>
    %cst_25 = arith.constant dense<0.000000e+00> : vector<1x8xf32>
    %27 = tpu.matmul %26, %2, %cst_25 {dimension_numbers = #tpu.dot_dimension_numbers<[1], [0], [0], [1], [0, 0, 1, 1], [], []>} : vector<1x16xbf16>, vector<16x8xbf16>, vector<1x8xf32> -> vector<1x8xf32>
    %28 = arith.addf %27, %3 : vector<1x8xf32>
    %cst_26 = arith.constant 0.000000e+00 : f32
    %29 = vector.broadcast %cst_26 : f32 to vector<1x8xf32>
    %30 = arith.maximumf %28, %29 : vector<1x8xf32>
    %cst_27 = arith.constant 0.000000e+00 : f32
    %31 = vector.broadcast %cst_27 : f32 to vector<1x8xf32>
    %32 = arith.select %24, %31, %30 : vector<1x8xf32>
    %33 = tpu.iota {dimensions = array<i32: 0>} : vector<8x1xi32>
    %c0_i32_28 = arith.constant 0 : i32
    %34 = vector.broadcast %c0_i32_28 : i32 to vector<8x1xi32>
    %35 = arith.cmpi eq, %33, %34 : vector<8x1xi32>
    %c1_i32 = arith.constant 1 : i32
    %36 = tpu.dynamic_rotate %14 by %c1_i32 dim 0 : vector<8x8xf32>, i32 -> vector<8x8xf32>
    %37 = vector.shape_cast %35 : vector<8x1xi1> to vector<8x1xi1>
    %38 = vector.broadcast %37 : vector<8x1xi1> to vector<8x8xi1>
    %39 = vector.shape_cast %23 : vector<1x8xf32> to vector<1x8xf32>
    %40 = vector.broadcast %39 : vector<1x8xf32> to vector<8x8xf32>
    %41 = arith.select %38, %40, %36 : vector<8x8xi1>, vector<8x8xf32>
    %c7_i32 = arith.constant 7 : i32
    %42 = vector.broadcast %c7_i32 : i32 to vector<8x1xi32>
    %43 = arith.cmpi eq, %33, %42 : vector<8x1xi32>
    %c7_i32_29 = arith.constant 7 : i32
    %44 = tpu.dynamic_rotate %14 by %c7_i32_29 dim 0 : vector<8x8xf32>, i32 -> vector<8x8xf32>
    %45 = vector.shape_cast %43 : vector<8x1xi1> to vector<8x1xi1>
    %46 = vector.broadcast %45 : vector<8x1xi1> to vector<8x8xi1>
    %47 = vector.shape_cast %32 : vector<1x8xf32> to vector<1x8xf32>
    %48 = vector.broadcast %47 : vector<1x8xf32> to vector<8x8xf32>
    %49 = arith.select %46, %48, %44 : vector<8x8xi1>, vector<8x8xf32>
    %50 = tpu.concatenate %41, %14, %49 in 1 : vector<8x8xf32>, vector<8x8xf32>, vector<8x8xf32> -> vector<8x24xf32>
    %51 = arith.truncf %50 : vector<8x24xf32> to vector<8x24xbf16>
    %c0_30 = arith.constant 0 : index
    %c0_31 = arith.constant 0 : index
    %52 = vector.load %arg7[%c0_30, %c0_31] : memref<24x8xbf16, #tpu.memory_space<vmem>>, vector<24x8xbf16>
    %cst_32 = arith.constant dense<0.000000e+00> : vector<8x8xf32>
    %53 = tpu.matmul %51, %52, %cst_32 {dimension_numbers = #tpu.dot_dimension_numbers<[1], [0], [0], [1], [0, 0, 1, 1], [], []>} : vector<8x24xbf16>, vector<24x8xbf16>, vector<8x8xf32> -> vector<8x8xf32>
    %c0_33 = arith.constant 0 : index
    %c0_34 = arith.constant 0 : index
    %54 = vector.load %arg8[%c0_33, %c0_34] : memref<1x8xf32, #tpu.memory_space<vmem>>, vector<1x8xf32>
    %55 = vector.broadcast %54 : vector<1x8xf32> to vector<8x8xf32>
    %56 = arith.addf %53, %55 : vector<8x8xf32>
    %cst_35 = arith.constant 0.000000e+00 : f32
    %57 = vector.broadcast %cst_35 : f32 to vector<8x8xf32>
    %58 = arith.maximumf %56, %57 : vector<8x8xf32>
    %c0_36 = arith.constant 0 : index
    %c0_37 = arith.constant 0 : index
    %59 = vector.load %arg14[%c0_36, %c0_37] : memref<8x32xf32, #tpu.memory_space<vmem>>, vector<8x32xf32>
    %60 = arith.truncf %58 : vector<8x8xf32> to vector<8x8xbf16>
    %c0_38 = arith.constant 0 : index
    %c0_39 = arith.constant 0 : index
    %61 = vector.load %arg9[%c0_38, %c0_39] : memref<8x32xbf16, #tpu.memory_space<vmem>>, vector<8x32xbf16>
    %cst_40 = arith.constant dense<0.000000e+00> : vector<8x32xf32>
    %62 = tpu.matmul %60, %61, %cst_40 {dimension_numbers = #tpu.dot_dimension_numbers<[1], [0], [0], [1], [0, 0, 1, 1], [], []>} : vector<8x8xbf16>, vector<8x32xbf16>, vector<8x32xf32> -> vector<8x32xf32>
    %c0_41 = arith.constant 0 : index
    %c0_42 = arith.constant 0 : index
    %63 = vector.load %arg10[%c0_41, %c0_42] : memref<1x32xf32, #tpu.memory_space<vmem>>, vector<1x32xf32>
    %64 = vector.broadcast %63 : vector<1x32xf32> to vector<8x32xf32>
    %65 = arith.addf %62, %64 : vector<8x32xf32>
    %66 = arith.addf %59, %65 : vector<8x32xf32>
    %c0_43 = arith.constant 0 : index
    %c0_44 = arith.constant 0 : index
    %67 = vector.load %arg14[%c0_43, %c0_44] : memref<8x32xf32, #tpu.memory_space<vmem>>, vector<8x32xf32>
    tpu.vector_store %arg14[%c0_43, %c0_44], %66 {strides = array<i32>} : memref<8x32xf32, #tpu.memory_space<vmem>>, vector<8x32xf32>,
    %c0_45 = arith.constant 0 : index
    %c0_46 = arith.constant 0 : index
    %68 = vector.load %arg14[%c0_45, %c0_46] : memref<8x32xf32, #tpu.memory_space<vmem>>, vector<8x32xf32>
    %cst_47 = arith.constant 0.000000e+00 : f32
    %69 = vector.broadcast %cst_47 : f32 to vector<8x32xf32>
    %70 = arith.maximumf %68, %69 : vector<8x32xf32>
    %71 = arith.truncf %70 : vector<8x32xf32> to vector<8x32xbf16>
    %c0_48 = arith.constant 0 : index
    %c0_49 = arith.constant 0 : index
    %c0_50 = arith.constant 0 : index
    %72 = vector.load %arg13[%c0_48, %c0_49, %c0_50] : memref<1x8x32xbf16, #tpu.memory_space<vmem>>, vector<1x8x32xbf16>
    %73 = vector.shape_cast %72 : vector<1x8x32xbf16> to vector<8x32xbf16>
    %74 = vector.shape_cast %71 : vector<8x32xbf16> to vector<1x8x32xbf16>
    tpu.vector_store %arg13[%c0_48, %c0_49, %c0_50], %74 {strides = array<i32>} : memref<1x8x32xbf16, #tpu.memory_space<vmem>>, vector<1x8x32xbf16>,
    return
  }
  func.func @transform_0(%arg0: i32, %arg1: i32) -> (i32, i32, i32) {
    %c0_i32 = arith.constant 0 : i32
    %c0_i32_0 = arith.constant 0 : i32
    return %arg0, %arg1, %c0_i32 : i32, i32, i32
  }
  func.func @transform_1(%arg0: i32, %arg1: i32) -> (i32, i32, i32, i32) {
    %c1_i32 = arith.constant 1 : i32
    %0 = arith.subi %arg1, %c1_i32 : i32
    %c0_i32 = arith.constant 0 : i32
    %1 = arith.maxsi %0, %c0_i32 : i32
    %c0_i32_0 = arith.constant 0 : i32
    %c0_i32_1 = arith.constant 0 : i32
    %c0_i32_2 = arith.constant 0 : i32
    return %arg0, %1, %c0_i32_0, %c0_i32_1 : i32, i32, i32, i32
  }
  func.func @transform_2(%arg0: i32, %arg1: i32) -> (i32, i32, i32, i32) {
    %c1_i32 = arith.constant 1 : i32
    %0 = arith.addi %arg1, %c1_i32 : i32
    %c3_i32 = arith.constant 3 : i32
    %1 = arith.minsi %0, %c3_i32 : i32
    %c0_i32 = arith.constant 0 : i32
    %c0_i32_0 = arith.constant 0 : i32
    %c0_i32_1 = arith.constant 0 : i32
    return %arg0, %1, %c0_i32, %c0_i32_0 : i32, i32, i32, i32
  }
  func.func @transform_3(%arg0: i32, %arg1: i32) -> (i32, i32) {
    %c0_i32 = arith.constant 0 : i32
    %c0_i32_0 = arith.constant 0 : i32
    %c0_i32_1 = arith.constant 0 : i32
    return %c0_i32, %c0_i32_0 : i32, i32
  }
  func.func @transform_4(%arg0: i32, %arg1: i32) -> (i32, i32) {
    %c0_i32 = arith.constant 0 : i32
    %c0_i32_0 = arith.constant 0 : i32
    %c0_i32_1 = arith.constant 0 : i32
    return %c0_i32, %c0_i32_0 : i32, i32
  }
  func.func @transform_5(%arg0: i32, %arg1: i32) -> (i32, i32) {
    %c0_i32 = arith.constant 0 : i32
    %c0_i32_0 = arith.constant 0 : i32
    %c0_i32_1 = arith.constant 0 : i32
    return %c0_i32, %c0_i32_0 : i32, i32
  }
  func.func @transform_6(%arg0: i32, %arg1: i32) -> (i32, i32) {
    %c0_i32 = arith.constant 0 : i32
    %c0_i32_0 = arith.constant 0 : i32
    %c0_i32_1 = arith.constant 0 : i32
    return %c0_i32, %c0_i32_0 : i32, i32
  }
  func.func @transform_7(%arg0: i32, %arg1: i32) -> (i32, i32) {
    %c0_i32 = arith.constant 0 : i32
    %c0_i32_0 = arith.constant 0 : i32
    %c0_i32_1 = arith.constant 0 : i32
    return %c0_i32, %c0_i32_0 : i32, i32
  }
  func.func @transform_8(%arg0: i32, %arg1: i32) -> (i32, i32) {
    %c0_i32 = arith.constant 0 : i32
    %c0_i32_0 = arith.constant 0 : i32
    %c0_i32_1 = arith.constant 0 : i32
    return %c0_i32, %c0_i32_0 : i32, i32
  }
  func.func @transform_9(%arg0: i32, %arg1: i32) -> (i32, i32) {
    %c0_i32 = arith.constant 0 : i32
    %c0_i32_0 = arith.constant 0 : i32
    %c0_i32_1 = arith.constant 0 : i32
    return %c0_i32, %c0_i32_0 : i32, i32
  }
  func.func @transform_10(%arg0: i32, %arg1: i32) -> (i32, i32) {
    %c0_i32 = arith.constant 0 : i32
    %c0_i32_0 = arith.constant 0 : i32
    %c0_i32_1 = arith.constant 0 : i32
    return %c0_i32, %c0_i32_0 : i32, i32
  }
  func.func @transform_11(%arg0: i32, %arg1: i32) -> (i32, i32, i32) {
    %c0_i32 = arith.constant 0 : i32
    %c0_i32_0 = arith.constant 0 : i32
    return %arg0, %arg1, %c0_i32 : i32, i32, i32
  }
}

module attributes {stable_mosaic.version = 11 : i64} {
  func.func @_bottleneck_kernel(%arg0: i32, %arg1: i32, %arg2: memref<1x8x16xbf16, #tpu.memory_space<vmem>>, %arg3: memref<1x1x1x16xbf16, #tpu.memory_space<vmem>>, %arg4: memref<1x1x1x16xbf16, #tpu.memory_space<vmem>>, %arg5: memref<16x8xbf16, #tpu.memory_space<vmem>>, %arg6: memref<1x8xf32, #tpu.memory_space<vmem>>, %arg7: memref<24x8xbf16, #tpu.memory_space<vmem>>, %arg8: memref<1x8xf32, #tpu.memory_space<vmem>>, %arg9: memref<8x32xbf16, #tpu.memory_space<vmem>>, %arg10: memref<1x32xf32, #tpu.memory_space<vmem>>, %arg11: memref<16x32xbf16, #tpu.memory_space<vmem>>, %arg12: memref<1x32xf32, #tpu.memory_space<vmem>>, %arg13: memref<1x8x32xbf16, #tpu.memory_space<vmem>>, %arg14: memref<8x32xf32, #tpu.memory_space<vmem>>) attributes {dimension_semantics = [#tpu.dimension_semantics<parallel>, #tpu.dimension_semantics<parallel>], iteration_bounds = array<i64: 2, 4>, scalar_prefetch = 0 : i64, scratch_operands = 1 : i64, tpu.core_type = #tpu.core_type<tc>, window_params = [{transform_indices = @transform_0, window_bounds = array<i64: 1, 8, 16>}, {transform_indices = @transform_1, window_bounds = array<i64: 1, 1, 1, 16>}, {transform_indices = @transform_2, window_bounds = array<i64: 1, 1, 1, 16>}, {pipeline_mode = #tpu.pipeline_mode<synchronous>, transform_indices = @transform_3, window_bounds = array<i64: 16, 8>}, {pipeline_mode = #tpu.pipeline_mode<synchronous>, transform_indices = @transform_4, window_bounds = array<i64: 1, 8>}, {pipeline_mode = #tpu.pipeline_mode<synchronous>, transform_indices = @transform_5, window_bounds = array<i64: 24, 8>}, {pipeline_mode = #tpu.pipeline_mode<synchronous>, transform_indices = @transform_6, window_bounds = array<i64: 1, 8>}, {pipeline_mode = #tpu.pipeline_mode<synchronous>, transform_indices = @transform_7, window_bounds = array<i64: 8, 32>}, {pipeline_mode = #tpu.pipeline_mode<synchronous>, transform_indices = @transform_8, window_bounds = array<i64: 1, 32>}, {pipeline_mode = #tpu.pipeline_mode<synchronous>, transform_indices = @transform_9, window_bounds = array<i64: 16, 32>}, {pipeline_mode = #tpu.pipeline_mode<synchronous>, transform_indices = @transform_10, window_bounds = array<i64: 1, 32>}, {transform_indices = @transform_11, window_bounds = array<i64: 1, 8, 32>}]} {
    %c0 = arith.constant 0 : index
    %c0_0 = arith.constant 0 : index
    %c0_1 = arith.constant 0 : index
    %0 = vector.load %arg2[%c0, %c0_0, %c0_1] : memref<1x8x16xbf16, #tpu.memory_space<vmem>>, vector<1x8x16xbf16>
    %1 = vector.shape_cast %0 : vector<1x8x16xbf16> to vector<8x16xbf16>
    %c0_2 = arith.constant 0 : index
    %c0_3 = arith.constant 0 : index
    %2 = vector.load %arg5[%c0_2, %c0_3] : memref<16x8xbf16, #tpu.memory_space<vmem>>, vector<16x8xbf16>
    %c0_4 = arith.constant 0 : index
    %c0_5 = arith.constant 0 : index
    %3 = vector.load %arg6[%c0_4, %c0_5] : memref<1x8xf32, #tpu.memory_space<vmem>>, vector<1x8xf32>
    %c0_6 = arith.constant 0 : index
    %c0_7 = arith.constant 0 : index
    %4 = vector.load %arg11[%c0_6, %c0_7] : memref<16x32xbf16, #tpu.memory_space<vmem>>, vector<16x32xbf16>
    %cst = arith.constant dense<0.000000e+00> : vector<8x32xf32>
    %5 = tpu.matmul %1, %4, %cst {dimension_numbers = #tpu.dot_dimension_numbers<[1], [0], [0], [1], [0, 0, 1, 1], [], []>} : vector<8x16xbf16>, vector<16x32xbf16>, vector<8x32xf32> -> vector<8x32xf32>
    %c0_8 = arith.constant 0 : index
    %c0_9 = arith.constant 0 : index
    %6 = vector.load %arg12[%c0_8, %c0_9] : memref<1x32xf32, #tpu.memory_space<vmem>>, vector<1x32xf32>
    %7 = vector.broadcast %6 : vector<1x32xf32> to vector<8x32xf32>
    %8 = arith.addf %5, %7 : vector<8x32xf32>
    %c0_10 = arith.constant 0 : index
    %c0_11 = arith.constant 0 : index
    %9 = vector.load %arg14[%c0_10, %c0_11] : memref<8x32xf32, #tpu.memory_space<vmem>>, vector<8x32xf32>
    tpu.vector_store %arg14[%c0_10, %c0_11], %8 {strides = array<i32>} : memref<8x32xf32, #tpu.memory_space<vmem>>, vector<8x32xf32>,
    %cst_12 = arith.constant dense<0.000000e+00> : vector<8x8xf32>
    %10 = tpu.matmul %1, %2, %cst_12 {dimension_numbers = #tpu.dot_dimension_numbers<[1], [0], [0], [1], [0, 0, 1, 1], [], []>} : vector<8x16xbf16>, vector<16x8xbf16>, vector<8x8xf32> -> vector<8x8xf32>
    %11 = vector.broadcast %3 : vector<1x8xf32> to vector<8x8xf32>
    %12 = arith.addf %10, %11 : vector<8x8xf32>
    %cst_13 = arith.constant 0.000000e+00 : f32
    %13 = vector.broadcast %cst_13 : f32 to vector<8x8xf32>
    %14 = arith.maximumf %12, %13 : vector<8x8xf32>
    %c0_i32 = arith.constant 0 : i32
    %15 = arith.cmpi eq, %arg1, %c0_i32 : i32
    %c0_14 = arith.constant 0 : index
    %c0_15 = arith.constant 0 : index
    %c0_16 = arith.constant 0 : index
    %c0_17 = arith.constant 0 : index
    %16 = vector.load %arg3[%c0_14, %c0_15, %c0_16, %c0_17] : memref<1x1x1x16xbf16, #tpu.memory_space<vmem>>, vector<1x1x1x16xbf16>
    %17 = vector.shape_cast %16 : vector<1x1x1x16xbf16> to vector<1x16xbf16>
    %cst_18 = arith.constant dense<0.000000e+00> : vector<1x8xf32>
    %18 = tpu.matmul %17, %2, %cst_18 {dimension_numbers = #tpu.dot_dimension_numbers<[1], [0], [0], [1], [0, 0, 1, 1], [], []>} : vector<1x16xbf16>, vector<16x8xbf16>, vector<1x8xf32> -> vector<1x8xf32>
    %19 = arith.addf %18, %3 : vector<1x8xf32>
    %cst_19 = arith.constant 0.000000e+00 : f32
    %20 = vector.broadcast %cst_19 : f32 to vector<1x8xf32>
    %21 = arith.maximumf %19, %20 : vector<1x8xf32>
    %cst_20 = arith.constant 0.000000e+00 : f32
    %22 = vector.broadcast %cst_20 : f32 to vector<1x8xf32>
    %23 = arith.select %15, %22, %21 : vector<1x8xf32>
    %c3_i32 = arith.constant 3 : i32
    %24 = arith.cmpi eq, %arg1, %c3_i32 : i32
    %c0_21 = arith.constant 0 : index
    %c0_22 = arith.constant 0 : index
    %c0_23 = arith.constant 0 : index
    %c0_24 = arith.constant 0 : index
    %25 = vector.load %arg4[%c0_21, %c0_22, %c0_23, %c0_24] : memref<1x1x1x16xbf16, #tpu.memory_space<vmem>>, vector<1x1x1x16xbf16>
    %26 = vector.shape_cast %25 : vector<1x1x1x16xbf16> to vector<1x16xbf16>
    %cst_25 = arith.constant dense<0.000000e+00> : vector<1x8xf32>
    %27 = tpu.matmul %26, %2, %cst_25 {dimension_numbers = #tpu.dot_dimension_numbers<[1], [0], [0], [1], [0, 0, 1, 1], [], []>} : vector<1x16xbf16>, vector<16x8xbf16>, vector<1x8xf32> -> vector<1x8xf32>
    %28 = arith.addf %27, %3 : vector<1x8xf32>
    %cst_26 = arith.constant 0.000000e+00 : f32
    %29 = vector.broadcast %cst_26 : f32 to vector<1x8xf32>
    %30 = arith.maximumf %28, %29 : vector<1x8xf32>
    %cst_27 = arith.constant 0.000000e+00 : f32
    %31 = vector.broadcast %cst_27 : f32 to vector<1x8xf32>
    %32 = arith.select %24, %31, %30 : vector<1x8xf32>
    %33 = tpu.iota {dimensions = array<i32: 0>} : vector<8x1xi32>
    %c0_i32_28 = arith.constant 0 : i32
    %34 = vector.broadcast %c0_i32_28 : i32 to vector<8x1xi32>
    %35 = arith.cmpi eq, %33, %34 : vector<8x1xi32>
    %c1_i32 = arith.constant 1 : i32
    %36 = tpu.dynamic_rotate %14 by %c1_i32 dim 0 : vector<8x8xf32>, i32 -> vector<8x8xf32>
    %37 = vector.shape_cast %35 : vector<8x1xi1> to vector<8x1xi1>
    %38 = vector.broadcast %37 : vector<8x1xi1> to vector<8x8xi1>
    %39 = vector.shape_cast %23 : vector<1x8xf32> to vector<1x8xf32>
    %40 = vector.broadcast %39 : vector<1x8xf32> to vector<8x8xf32>
    %41 = arith.select %38, %40, %36 : vector<8x8xi1>, vector<8x8xf32>
    %c7_i32 = arith.constant 7 : i32
    %42 = vector.broadcast %c7_i32 : i32 to vector<8x1xi32>
    %43 = arith.cmpi eq, %33, %42 : vector<8x1xi32>
    %c7_i32_29 = arith.constant 7 : i32
    %44 = tpu.dynamic_rotate %14 by %c7_i32_29 dim 0 : vector<8x8xf32>, i32 -> vector<8x8xf32>
    %45 = vector.shape_cast %43 : vector<8x1xi1> to vector<8x1xi1>
    %46 = vector.broadcast %45 : vector<8x1xi1> to vector<8x8xi1>
    %47 = vector.shape_cast %32 : vector<1x8xf32> to vector<1x8xf32>
    %48 = vector.broadcast %47 : vector<1x8xf32> to vector<8x8xf32>
    %49 = arith.select %46, %48, %44 : vector<8x8xi1>, vector<8x8xf32>
    %50 = tpu.concatenate %41, %14, %49 in 1 : vector<8x8xf32>, vector<8x8xf32>, vector<8x8xf32> -> vector<8x24xf32>
    %51 = arith.truncf %50 : vector<8x24xf32> to vector<8x24xbf16>
    %c0_30 = arith.constant 0 : index
    %c0_31 = arith.constant 0 : index
    %52 = vector.load %arg7[%c0_30, %c0_31] : memref<24x8xbf16, #tpu.memory_space<vmem>>, vector<24x8xbf16>
    %cst_32 = arith.constant dense<0.000000e+00> : vector<8x8xf32>
    %53 = tpu.matmul %51, %52, %cst_32 {dimension_numbers = #tpu.dot_dimension_numbers<[1], [0], [0], [1], [0, 0, 1, 1], [], []>} : vector<8x24xbf16>, vector<24x8xbf16>, vector<8x8xf32> -> vector<8x8xf32>
    %c0_33 = arith.constant 0 : index
    %c0_34 = arith.constant 0 : index
    %54 = vector.load %arg8[%c0_33, %c0_34] : memref<1x8xf32, #tpu.memory_space<vmem>>, vector<1x8xf32>
    %55 = vector.broadcast %54 : vector<1x8xf32> to vector<8x8xf32>
    %56 = arith.addf %53, %55 : vector<8x8xf32>
    %cst_35 = arith.constant 0.000000e+00 : f32
    %57 = vector.broadcast %cst_35 : f32 to vector<8x8xf32>
    %58 = arith.maximumf %56, %57 : vector<8x8xf32>
    %c0_36 = arith.constant 0 : index
    %c0_37 = arith.constant 0 : index
    %59 = vector.load %arg14[%c0_36, %c0_37] : memref<8x32xf32, #tpu.memory_space<vmem>>, vector<8x32xf32>
    %60 = arith.truncf %58 : vector<8x8xf32> to vector<8x8xbf16>
    %c0_38 = arith.constant 0 : index
    %c0_39 = arith.constant 0 : index
    %61 = vector.load %arg9[%c0_38, %c0_39] : memref<8x32xbf16, #tpu.memory_space<vmem>>, vector<8x32xbf16>
    %cst_40 = arith.constant dense<0.000000e+00> : vector<8x32xf32>
    %62 = tpu.matmul %60, %61, %cst_40 {dimension_numbers = #tpu.dot_dimension_numbers<[1], [0], [0], [1], [0, 0, 1, 1], [], []>} : vector<8x8xbf16>, vector<8x32xbf16>, vector<8x32xf32> -> vector<8x32xf32>
    %c0_41 = arith.constant 0 : index
    %c0_42 = arith.constant 0 : index
    %63 = vector.load %arg10[%c0_41, %c0_42] : memref<1x32xf32, #tpu.memory_space<vmem>>, vector<1x32xf32>
    %64 = vector.broadcast %63 : vector<1x32xf32> to vector<8x32xf32>
    %65 = arith.addf %62, %64 : vector<8x32xf32>
    %66 = arith.addf %59, %65 : vector<8x32xf32>
    %c0_43 = arith.constant 0 : index
    %c0_44 = arith.constant 0 : index
    %67 = vector.load %arg14[%c0_43, %c0_44] : memref<8x32xf32, #tpu.memory_space<vmem>>, vector<8x32xf32>
    tpu.vector_store %arg14[%c0_43, %c0_44], %66 {strides = array<i32>} : memref<8x32xf32, #tpu.memory_space<vmem>>, vector<8x32xf32>,
    %c0_45 = arith.constant 0 : index
    %c0_46 = arith.constant 0 : index
    %68 = vector.load %arg14[%c0_45, %c0_46] : memref<8x32xf32, #tpu.memory_space<vmem>>, vector<8x32xf32>
    %cst_47 = arith.constant 0.000000e+00 : f32
    %69 = vector.broadcast %cst_47 : f32 to vector<8x32xf32>
    %70 = arith.maximumf %68, %69 : vector<8x32xf32>
    %71 = arith.truncf %70 : vector<8x32xf32> to vector<8x32xbf16>
    %c0_48 = arith.constant 0 : index
    %c0_49 = arith.constant 0 : index
    %c0_50 = arith.constant 0 : index
    %72 = vector.load %arg13[%c0_48, %c0_49, %c0_50] : memref<1x8x32xbf16, #tpu.memory_space<vmem>>, vector<1x8x32xbf16>
    %73 = vector.shape_cast %72 : vector<1x8x32xbf16> to vector<8x32xbf16>
    %74 = vector.shape_cast %71 : vector<8x32xbf16> to vector<1x8x32xbf16>
    tpu.vector_store %arg13[%c0_48, %c0_49, %c0_50], %74 {strides = array<i32>} : memref<1x8x32xbf16, #tpu.memory_space<vmem>>, vector<1x8x32xbf16>,
    return
  }
  func.func @transform_0(%arg0: i32, %arg1: i32) -> (i32, i32, i32) {
    %c0_i32 = arith.constant 0 : i32
    %c0_i32_0 = arith.constant 0 : i32
    return %arg0, %arg1, %c0_i32 : i32, i32, i32
  }
  func.func @transform_1(%arg0: i32, %arg1: i32) -> (i32, i32, i32, i32) {
    %c1_i32 = arith.constant 1 : i32
    %0 = arith.subi %arg1, %c1_i32 : i32
    %c0_i32 = arith.constant 0 : i32
    %1 = arith.maxsi %0, %c0_i32 : i32
    %c0_i32_0 = arith.constant 0 : i32
    %c0_i32_1 = arith.constant 0 : i32
    %c0_i32_2 = arith.constant 0 : i32
    return %arg0, %1, %c0_i32_0, %c0_i32_1 : i32, i32, i32, i32
  }
  func.func @transform_2(%arg0: i32, %arg1: i32) -> (i32, i32, i32, i32) {
    %c1_i32 = arith.constant 1 : i32
    %0 = arith.addi %arg1, %c1_i32 : i32
    %c3_i32 = arith.constant 3 : i32
    %1 = arith.minsi %0, %c3_i32 : i32
    %c0_i32 = arith.constant 0 : i32
    %c0_i32_0 = arith.constant 0 : i32
    %c0_i32_1 = arith.constant 0 : i32
    return %arg0, %1, %c0_i32, %c0_i32_0 : i32, i32, i32, i32
  }
  func.func @transform_3(%arg0: i32, %arg1: i32) -> (i32, i32) {
    %c0_i32 = arith.constant 0 : i32
    %c0_i32_0 = arith.constant 0 : i32
    %c0_i32_1 = arith.constant 0 : i32
    return %c0_i32, %c0_i32_0 : i32, i32
  }
  func.func @transform_4(%arg0: i32, %arg1: i32) -> (i32, i32) {
    %c0_i32 = arith.constant 0 : i32
    %c0_i32_0 = arith.constant 0 : i32
    %c0_i32_1 = arith.constant 0 : i32
    return %c0_i32, %c0_i32_0 : i32, i32
  }
  func.func @transform_5(%arg0: i32, %arg1: i32) -> (i32, i32) {
    %c0_i32 = arith.constant 0 : i32
    %c0_i32_0 = arith.constant 0 : i32
    %c0_i32_1 = arith.constant 0 : i32
    return %c0_i32, %c0_i32_0 : i32, i32
  }
  func.func @transform_6(%arg0: i32, %arg1: i32) -> (i32, i32) {
    %c0_i32 = arith.constant 0 : i32
    %c0_i32_0 = arith.constant 0 : i32
    %c0_i32_1 = arith.constant 0 : i32
    return %c0_i32, %c0_i32_0 : i32, i32
  }
  func.func @transform_7(%arg0: i32, %arg1: i32) -> (i32, i32) {
    %c0_i32 = arith.constant 0 : i32
    %c0_i32_0 = arith.constant 0 : i32
    %c0_i32_1 = arith.constant 0 : i32
    return %c0_i32, %c0_i32_0 : i32, i32
  }
  func.func @transform_8(%arg0: i32, %arg1: i32) -> (i32, i32) {
    %c0_i32 = arith.constant 0 : i32
    %c0_i32_0 = arith.constant 0 : i32
    %c0_i32_1 = arith.constant 0 : i32
    return %c0_i32, %c0_i32_0 : i32, i32
  }
  func.func @transform_9(%arg0: i32, %arg1: i32) -> (i32, i32) {
    %c0_i32 = arith.constant 0 : i32
    %c0_i32_0 = arith.constant 0 : i32
    %c0_i32_1 = arith.constant 0 : i32
    return %c0_i32, %c0_i32_0 : i32, i32
  }
  func.func @transform_10(%arg0: i32, %arg1: i32) -> (i32, i32) {
    %c0_i32 = arith.constant 0 : i32
    %c0_i32_0 = arith.constant 0 : i32
    %c0_i32_1 = arith.constant 0 : i32
    return %c0_i32, %c0_i32_0 : i32, i32
  }
  func.func @transform_11(%arg0: i32, %arg1: i32) -> (i32, i32, i32) {
    %c0_i32 = arith.constant 0 : i32
    %c0_i32_0 = arith.constant 0 : i32
    return %arg0, %arg1, %c0_i32 : i32, i32, i32
  }
}

</mosaic_0001>

<bundles_post_ra>
// kernel: tpu_custom_call.1
= control target key start
LH: loop header
LB: loop body
LE: loop exit
PB: predicated region body
PF: predicated region fallthrough
CT: control target
= control target key end

     0   :  { %s1528_s0 = inlined_call_operand.vmem [shape: bf16[2,32,16], index: 0, kind: input, shape index: {}]   ;;  %s1529_s1 = inlined_call_operand.vmem [shape: bf16[2,4,1,16], index: 1, kind: input, shape index: {}]   ;;  %s1530_s2 = inlined_call_operand.vmem [shape: bf16[2,4,1,16], index: 2, kind: input, shape index: {}]   ;;  %s1531_s3 = inlined_call_operand.vmem [shape: bf16[16,8], index: 3, kind: input, shape index: {}]   ;;  %s1532_s4 = inlined_call_operand.vmem [shape: f32[1,8], index: 4, kind: input, shape index: {}]   ;;  %s1533_s5 = inlined_call_operand.vmem [shape: bf16[24,8], index: 5, kind: input, shape index: {}]   ;;  %s1534_s6 = inlined_call_operand.vmem [shape: f32[1,8], index: 6, kind: input, shape index: {}]   ;;  %s1535_s7 = inlined_call_operand.vmem [shape: bf16[8,32], index: 7, kind: input, shape index: {}]   ;;  %s1536_s8 = inlined_call_operand.vmem [shape: f32[1,32], index: 8, kind: input, shape index: {}]   ;;  %s1537_s9 = inlined_call_operand.vmem [shape: bf16[16,32], index: 9, kind: input, shape index: {}]   ;;  %s1538_s10 = inlined_call_operand.vmem [shape: f32[1,32], index: 10, kind: input, shape index: {}]   ;;  %s1539_s11 = inlined_call_operand.hbm [shape: bf16[2,32,32], index: 11, kind: output, shape index: {}]  }
   0x1   :  { %1543 = sst [smem:[#allocation9_spill]] %s1528_s0 }
   0x2   :  { %1544 = sst [smem:[#allocation10_spill]] %s1531_s3 }
   0x3   :  { %1545 = sst [smem:[#allocation11_spill]] %s1537_s9 }
   0x4   :  { %16 = vsyncpa [#allocation4], 0 }
   0x5   :  { %18 = vsyncpa [#allocation4 + $0x1], 0  ;;  %s1344_s17 = smov 0   ;;  %s1346_s18 = smov 0  }
   0x6   :  { %s1348_s19 = smov 0   ;;  %s1350_s20 = smov 0  }
   0x7   :  { %s1352_s21 = smov 0   ;;  %s1354_s22 = smov 0  }
   0x8   :  { %s1356_s23 = smov 0   ;;  %s1358_s24 = smov 0  }
   0x9 LB: > { %1546 = sst [smem:[#allocation6_spill]] %s1273_s23  ;;  %s1014_s25 = sadd.s32 4294967295, %s1277_s24   ;;  %s1277_s24 = sphi %s1358_s24, %s24_s24   ;;  %s1273_s23 = sphi %s1356_s23, %s1557_s23   ;;  %s1269_s22 = sphi %s1354_s22, %s1562_s22   ;;  %s1265_s21 = sphi %s1352_s21, %s1555_s21   ;;  %s1261_s20 = sphi %s1350_s20, %s1561_s20   ;;  %s1257_s19 = sphi %s1348_s19, %s1560_s19   ;;  %s1253_s18 = sphi %s1346_s18, %s1559_s18   ;;  %s1249_s17 = sphi %s1344_s17, %s1558_s17  }
   0xa   : > { %s1015_s26 = sadd.s32 4294967294, %s1277_s24   ;;  %s33_s27 = sadd.s32 1, %s1269_s22 }
   0xb   : > { %p34_p0 = scmp.ge.s32.totalorder %s33_s27, 4  ;;  %s36_s28 = sadd.s32 1, %s1273_s23 }
   0xc   : > { %p319_p1 = scmp.ne.s32.totalorder %s1257_s19, %s1253_s18  ;;  %p320_p2 = scmp.eq.s32.totalorder %s1014_s25, 7 }
   0xd   : > { %s1564_s27 = smov (%p34_p0, %s33_s27), 0  ;;  %s1566_s28 = smov (!%p34_p0, %s36_s28), %s1273_s23 }
   0xe   : > { %1547 = sst [smem:[#allocation7_spill]] %s1564_s27  ;;  %s305_s29 = ssub.s32 %s1269_s22, %s1564_s27 }
   0xf   : > { %p1395_p3 = por %p320_p2, %p319_p1  ;;  %p38_p4 = scmp.ge.s32.totalorder %s1566_s28, 2 }
  0x10   : > { %p325_p5 = scmp.ne.s32.totalorder %s1253_s18, %s1249_s17  ;;  %p326_p6 = scmp.eq.s32.totalorder %s1015_s26, 7 }
  0x11   : > { %p1020_p7 = scmp.ge.s32.totalorder %s1277_s24, 1  ;;  %s1568_s28 = smov (%p38_p4, %s1566_s28), 0 }
  0x12   : > { %1549 = sst [smem:[#allocation8_spill]] %s1568_s28  ;;  %p1404_p8 = por %p326_p6, %p325_p5 }
  0x13   : > { %p411_p9 = scmp.lt.s32.totalorder %s1277_s24, 9  ;;  %s304_s13 = ssub.s32 %s1273_s23, %s1568_s28 }
  0x14   : > { %s309_s14 = sadd.s32 1, %s1257_s19  ;;  %s306_s15 = sor.u32 %s305_s29, %s304_s13 }
  0x15   : > { %p412_p10 = pnand %p1020_p7, %p411_p9  ;;  %p307_p11 = scmp.eq.s32.totalorder %s306_s15, 0 }
  0x16   : > { %s1551_s3 = sld [smem:[#allocation10_spill]] (!%p412_p10)  ;;  %p474_p12 = scmp.lt.s32.totalorder (!%p412_p10), %s1265_s21, 1 }
  0x17   : > { %s1413_s16 = scalar_select %p307_p11, %s1257_s19, %s309_s14  }
  0x18   : > { %415 = sbr.rel (%p412_p10) target bundleno = 784 (0x310), region = 64  ;;  %s1552_s9 = sld [smem:[#allocation11_spill]] (!%p412_p10) }
  0x19   : > { %p476_p13 = scmp.lt.s32.totalorder (!%p412_p10), %s1261_s20, 3  ;;  %s1024_s27 = sadd.s32 (!%p412_p10), 4294967295, %s1261_s20 }
  0x1a   : > { %s495_s13 = sadd.s32 (!%p412_p10), 1, %s1261_s20  ;;  %p483_p0 = scmp.gt.s32.totalorder (!%p412_p10), %s1024_s27, 0 }
  0x1b   : > { %p1025_p1 = scmp.lt.s32.totalorder (!%p412_p10), %s1024_s27, 3  ;;  %p1429_p2 = scmp.lt.s32.totalorder (!%p412_p10), %s495_s13, 3 }
  0x1c   : > { %s1554_s0 = sld [smem:[#allocation9_spill]] (!%p412_p10)  ;;  %p627_p4 = scmp.eq.s32.totalorder (!%p412_p10), %s1261_s20, 0 }
  0x1d   : > { %v1181_v0 = vld [vmem:[%s1551_s3] sm:$0xff]   ;;  %v1279_v1 = vmov 0.0   ;;  %vm1280_vm0 = vmmov 0   ;;  %s475_s14 = scalar_select %p474_p12, %s1265_s21, 1  ;;  %vm528_vm1 = vcmask 130048   ;;  %v575_v6 = vlaneseq }
  0x1e   : > { %1074 = vmatprep.subr.bf16.mxu1 %v1279_v1  ;;  %1068 = vmatprep.subr.bf16.mxu0 %v1279_v1  ;;  %v1182_v2 = vld [vmem:[%s1552_s9] sm:$0xff]   ;;  %s477_s15 = scalar_select %p476_p13, %s1261_s20, 3  ;;  %v1183_v8 = vld [vmem:[%s1533_s5 + $0x8] ss:$0 sps:$4 sm:$0xff]   ;;  %vm782_vm2 = vcmask 1043456   ;;  %vm572_vm3 = vcmask 261120  }
  0x1f   : > { %1075 = vmatpush3.bf16.msra.mxu1 %v1181_v0  ;;  %1070 = vmatprep.mubr.msk.bf16.mxu0 %vm1280_vm0, %v1279_v1  ;;  %s1022_s25 = sshll.u32 %s475_s14, 2  ;;  %s1570_s27 = smov (!%p483_p0, %s1024_s27), 0  ;;  %v576_v7 = vshrl.u32 %v575_v6, 7  ;;  %v512_v10 = vld [vmem:[%s1532_s4] sm:$0x1]  ;;  %v784_v11 = vsel %vm782_vm2, %v1183_v8, 0 }
  0x20   : > { %1069 = vmatpush3.bf16.msra.mxu0 %v1182_v2  ;;  %1076 = vmatprep.mubr.msk.bf16.mxu1 %vm1280_vm0, %v1279_v1  ;;  %s479_s3 = sadd.s32 %s1022_s25, %s477_s15  ;;  %s1572_s13 = smov (!%p1429_p2, %s495_s13), 3  ;;  %v1035_v13 = vld [vmem:[%s1538_s10] ss:$0 sm:$0xff]  ;;  %vm755_vm8 = vcmask 64512   ;;  %vm778_vm9 = vcmask 195584   ;;  %vm888_vm10 = vcmask 257024  }
  0x21   : > { %1086 = vmatprep.subr.bf16.mxu1 %v1279_v1  ;;  %1080 = vmatprep.subr.bf16.mxu0 %v1279_v1  ;;  %s1023_s26 = sshll.u32 %s479_s3, 2  ;;  %s1574_s27 = smov (!%p1025_p1, %s1570_s27), 3  ;;  %v577_v9 = vsub.s32 0, %v576_v7  ;;  %v1184_v20 = vld [vmem:[%s1533_s5] sm:$0xff]   ;;  %vm738_vm6 = vcmp.eq.s32.totalorder %v576_v7, 7  ;;  %vm729_vm7 = vcmp.eq.s32.totalorder %v576_v7, 0 }
  0x22   : > { %s481_s23 = scalar_lea.vmem %s1554_s0, %s1023_s26  ;;  %s1576_s13 = smov (!%p1429_p2, %s1572_s13), 3  ;;  %v829_v28 = vld [vmem:[%s1535_s7] sm:$0xf] }
  0x23   : > { %v509_v3 = vld [vmem:[%s481_s23] sm:$0xf]  ;;  %s490_s3 = sadd.s32 %s1574_s27, %s1022_s25  ;;  %s503_s14 = sadd.s32 %s1022_s25, %s1576_s13  ;;  %v578_v12 = vrot.slane %v512_v10, %v577_v9  ;;  %v841_v31 = vsel %vm782_vm2, %v829_v28, 0 }
  0x24   : > { %1071 = vmatmul.mubr.msk.bf16.vlgmr.msra.gmra.mxu0 %vm528_vm1, %v509_v3  ;;  %1077 = vmatmul.mubr.msk.bf16.vlgmr.msra.gmra.mxu1 %vm528_vm1, %v509_v3  ;;  %s491_s28 = scalar_lea.vmem %s1529_s1, %s490_s3  ;;  %s504_s0 = scalar_lea.vmem %s1530_s2, %s503_s14  ;;  %v1042_v55 = vld [vmem:[%s1534_s6] ss:$0 sm:$0xff] }
  0x25   : > { %1087 = vmatpush3.bf16.msra.mxu1 %v1181_v0  ;;  %1081 = vmatpush3.bf16.msra.mxu0 %v1181_v0  ;;  %v628_v4 = vld [vmem:[%s491_s28] sm:$0x1]  ;;  %p677_p5 = scmp.eq.s32.totalorder %s1261_s20, 3  ;;  %s1281_s15 = smov 8  }
  0x26   : > { %1082 = vmatprep.mubr.msk.bf16.mxu0 %vm1280_vm0, %v1279_v1  ;;  %1088 = vmatprep.mubr.msk.bf16.mxu1 %vm1280_vm0, %v1279_v1  ;;  %v678_v5 = vld [vmem:[%s504_s0] sm:$0x1]  ;;  %s673_s9 = scalar_select %p627_p4, 1, 0 }
  0x27   : > { %1092 = vmatprep.subr.bf16.mxu0 %v1279_v1  ;;  %1100 = vmatprep.subr.bf16.mxu1 %v1279_v1  ;;  %s723_s14 = scalar_select %p677_p5, 1, 0  ;;  %v1046_v63 = vld [vmem:[%s1536_s8] ss:$0 sm:$0xff] }
  0x28   : > { %v674_v26 = vstv %s673_s9  ;;  %s1282_s13 = smov 16   ;;  %s471_s9 = sand.u32 1, %s1253_s18  }
  0x29   : > { %v724_v27 = vstv %s723_s14  ;;  %vm675_vm4 = vcmp.eq.s32.totalorder %v674_v26, 1  ;;  %s1021_s23 = sshll.u32 %s471_s9, 2  ;;  %s1049_s28 = sshll.u32 %s1265_s21, 2 }
  0x2a   : > { %vm725_vm5 = vcmp.eq.s32.totalorder %v724_v27, 1  ;;  %s902_s14 = sadd.s32 %s1261_s20, %s1049_s28  ;;  %s473_s26 = scalar_lea.vmem [#allocation3], %s1021_s23 }
  0x2b   : > { %s906_s27 = sshll.u32 %s473_s26, 4  ;;  %s891_s29 = scalar_lea.sflag [#allocation4], %s471_s9  ;;  %s907_s27 = int_to_ptr.vmem [resolvable:$true] %s906_s27 }
  0x2c   : > { %1083 = vmatmul.mubr.msk.bf16.vlgmr.msra.gmra.mxu0 %vm528_vm1, %v628_v4  ;;  %1089 = vmatmul.mubr.msk.bf16.vlgmr.msra.gmra.mxu1 %vm528_vm1, %v678_v5  ;;  %s1185_s3 = scalar_lea.vmem %s907_s27, 64  ;;  %s1283_s20 = smov [#allocation3]  }
  0x2d   : > { %1096 = vmatprep.mubr.msk.bf16.mxu0 %vm1280_vm0, %v1279_v1  ;;  %1102 = vmatprep.mubr.msk.bf16.mxu1 %vm1280_vm0, %v1279_v1  ;;  %p1186_p6 = scmp.ne.s32.totalorder %s907_s27, %s1185_s3  ;;  %s1189_s21 = sshll.u32 %s1283_s20, 4  ;;  %s1190_s21 = int_to_ptr.vmem [resolvable:$false] %s1189_s21 }
  0x2e   : > { %1093 = vmatpush3.bf16.msra.mxu0 %v784_v11  ;;  %1101 = vmatpush3.bf16.msra.mxu1 %v841_v31  ;;  %s1191_s23 = scalar_lea.vmem %s1190_s21, 128  ;;  %p1192_p10 = scmp.lt.s32.totalorder %s907_s27, %s1190_s21 }
  0x2f   : > { %1094 = vmatprep.subr.bf16.mxu0 %v1279_v1  ;;  %p1187_p7 = pnand %p1186_p6, %p1395_p3  ;;  %p1193_p11 = scmp.lt.s32.totalorder %s1191_s23, %s1185_s3 }
  0x31   : > { %p1188_p9 = pneg %p1187_p7  ;;  %p1194_p12 = por %p1193_p11, %p1192_p10 }
  0x32   : > { %1095 = vmatpush3.bf16.msra.mxu0 %v1184_v20 }
  0x33   : > { %p1195_p13 = pnand %p1194_p12, %p1188_p9 }
  0xe4   : > { %v566_v14 = vpop.f32.mrf.mxu0  ;;  %v620_v15 = vpop.f32.mrf.mxu1 }
  0xe5   : > { %v567_v16 = vadd.f32 %v1035_v13, %v566_v14  ;;  %v621_v17 = vadd.f32 %v620_v15, %v578_v12 }
  0xe6   : > { %v1072_v18 = vpop.f32.mrf.mxu0  ;;  %v1078_v19 = vpop.f32.mrf.mxu1 }
  0xe7   : > { %573 = vst.msk [vmem:[#allocation2] sm:$0xff] %vm572_vm3, %v567_v16  ;;  %v626_v21 = vmax.f32 %v621_v17, 0.0 }
  0xe8   : > { %v569_v22 = vpop.f32.mrf.mxu0  ;;  %v623_v23 = vpop.f32.mrf.mxu1 }
  0xe9   : > { %748 = vrot.lane.b32.xlu0 %v626_v21, %s1281_s15  ;;  %v730_v42 = vrot.slane %v626_v21, 7  ;;  %v739_v43 = vrot.slane %v626_v21, 1  ;;  %s1050_s15 = sshll.u32 %s902_s14, 6 }
  0xea   : > { %v1073_v24 = vpop.f32.mrf.mxu0  ;;  %v1079_v25 = vpop.f32.mrf.mxu1  ;;  %s904_s0 = scalar_lea.hbm %s1539_s11, %s1050_s15 }
  0xec   : > { %v666_v29 = vpop.f32.mrf.mxu0  ;;  %v716_v30 = vpop.f32.mrf.mxu1 }
  0xed   : > { %v667_v32 = vadd.f32 %v666_v29, %v512_v10  ;;  %v717_v33 = vadd.f32 %v716_v30, %v512_v10 }
  0xee   : > { %v1090_v34 = vpop.f32.mrf.mxu1  ;;  %v1084_v35 = vpop.f32.mrf.mxu0  ;;  %v827_v2 = vld [vmem:[#allocation2] sm:$0xff] }
  0xef   : > { %v672_v36 = vmax.f32 %v667_v32, 0.0  ;;  %v722_v37 = vmax.f32 %v717_v33, 0.0 }
  0xf0   : > { %v719_v38 = vpop.f32.mrf.mxu1  ;;  %v669_v39 = vpop.f32.mrf.mxu0 }
  0xf1   : > { %v676_v40 = vsel %vm675_vm4, 0.0, %v672_v36  ;;  %v726_v41 = vsel %vm725_vm5, 0.0, %v722_v37 }
  0xf2   : > { %v736_v44 = vrot.slane %v676_v40, %v577_v9  ;;  %v745_v45 = vrot.slane %v726_v41, %v577_v9  ;;  %v1091_v46 = vpop.f32.mrf.mxu1  ;;  %v1085_v47 = vpop.f32.mrf.mxu0 }
  0xf4   : > { %v746_v48 = vsel %vm738_vm6, %v745_v45, %v739_v43  ;;  %v737_v49 = vsel %vm729_vm7, %v736_v44, %v730_v42 }
  0xf5   : > { %752 = vrot.lane.b32.xlu0 %v746_v48, %s1282_s13 }
 0x15b   : > { %v749_v50 = vpop.permute.xlu0 %748 }
 0x15c   : > { %v756_v51 = vsel %vm755_vm8, %v737_v49, %v749_v50 }
 0x167   : > { %v753_v52 = vpop.permute.xlu0 %752 }
 0x168   : > { %v757_v53 = vsel %vm528_vm1, %v756_v51, %v753_v52 }
 0x169   : > { %v758_v54 = vpack.c.bf16 %v757_v53, %v757_v53 }
 0x16b   : > { %1097 = vmatmul.mubr.msk.bf16.vlgmr.msra.gmra.mxu0 %vm778_vm9, %v758_v54 }
 0x22b   : > { %v820_v56 = vpop.f32.mrf.mxu0 }
 0x22c   : > { %v821_v57 = vadd.f32 %v1042_v55, %v820_v56 }
 0x22d   : > { %v1098_v58 = vpop.f32.mrf.mxu0 }
 0x22e   : > { %v826_v59 = vmax.f32 %v821_v57, 0.0 }
 0x22f   : > { %v823_v60 = vpop.f32.mrf.mxu0 }
 0x230   : > { %v828_v61 = vpack.c.bf16 %v826_v59, %v826_v59 }
 0x231   : > { %v1099_v62 = vpop.f32.mrf.mxu0 }
 0x232   : > { %1103 = vmatmul.mubr.msk.bf16.vlgmr.msra.gmra.mxu1 %vm755_vm8, %v828_v61 }
 0x2f2   : > { %v877_v0 = vpop.f32.mrf.mxu1 }
 0x2f3   : > { %v878_v1 = vadd.f32 %v1046_v63, %v877_v0 }
 0x2f4   : > { %v1104_v3 = vpop.f32.mrf.mxu1 }
 0x2f5   : > { %v883_v4 = vadd.f32 %v878_v1, %v827_v2 }
 0x2f6   : > { %v880_v5 = vpop.f32.mrf.mxu1 }
 0x2f7   : > { %884 = vst.msk [vmem:[#allocation2] sm:$0xff] %vm572_vm3, %v883_v4 }
 0x2f8   : > { %v1105_v6 = vpop.f32.mrf.mxu1 }
 0x2fe   : > { %v885_v7 = vld [vmem:[#allocation2] sm:$0xff] }
 0x2ff   : > { %v886_v8 = vmax.f32 %v885_v7, 0.0 }
 0x301   : > { %v887_v9 = vpack.c.bf16 %v886_v8, %v886_v8 }
 0x303   : > { %889 = vst.msk [vmem:[%s473_s26] sm:$0xf] %vm888_vm10, %v887_v9 }
 0x304   : > { %1198 = shalt.err (!%p1195_p13)
}
 0x305   : > { %s1199_s28 = scalar_lea.hbm %s904_s0, 64  ;;  %s1203_s15 = scalar_lea.hbm %s1539_s11, 512 }
 0x306   : > { %p1200_p0 = scmp.ne.s32.totalorder %s904_s0, %s1199_s28  ;;  %p1204_p4 = scmp.lt.s32.totalorder %s904_s0, %s1539_s11 }
 0x307   : > { %p1205_p5 = scmp.lt.s32.totalorder %s1203_s15, %s1199_s28 }
 0x308   : > { %p1201_p1 = pnand %p1200_p0, %p1395_p3 }
 0x309   : > { %p1206_p6 = por %p1205_p5, %p1204_p4 }
 0x30a   : > { %p1202_p2 = pneg %p1201_p1 }
 0x30c   : > { %p1207_p7 = pnand %p1206_p6, %p1202_p2 }
 0x30e   : > { %1210 = shalt.err (!%p1207_p7)
}
 0x30f   : > { %1106 = dma.vmem_to_hbm [thread:$0]  (%p1395_p3), %s907_s27, 64, %s904_s0, %s891_s29  }
 0x310 PF: > { %p1112_p9 = scmp.ge.s32.totalorder %s1277_s24, 2  ;;  %s918_s25 = sand.u32 1, %s1249_s17  }
 0x311   : > { %s919_s3 = scalar_lea.sflag [#allocation4], %s918_s25 }
 0x312   : > { %p1109_p10 = pnand %p1112_p9, %p1404_p8 }
 0x314   : > { %p1110_p11 = pneg %p1109_p10 }
 0x316   : > { %1244 = dma.done.wait (%p1110_p11), %s919_s3, 64  }
 0x317   : > { %1246 = vsyncadd (%p1110_p11), %s919_s3, 4294967232  ;;  %s24_s24 = sadd.s32 1, %s1277_s24   ;;  %s1555_s21 = sld [smem:[#allocation6_spill]] }
 0x318   : > { %p21_p12 = scmp.ge.s32.totalorder %s24_s24, 10   ;;  %s1556_s30 = sld [smem:[#allocation7_spill]] }
 0x319   : > { %s1557_s23 = sld [smem:[#allocation8_spill]]  ;;  %s1558_s17 = smov %s1253_s18 }
 0x31a   : > { %s1559_s18 = smov %s1257_s19  ;;  %s1560_s19 = smov %s1413_s16 }
 0x31b   : > { %s1561_s20 = smov %s1269_s22  ;;  %23 = sbr.rel (!%p21_p12) target bundleno = 9 (0x9), region = 105 }
 0x31e   : > { %s1562_s22 = smov %s1556_s30 }
 0x320   :  { %924 = vsyncpa [#allocation4], 1 }
 0x321   :  { %926 = vsyncpa [#allocation4 + $0x1], 1 }

// kernel: tpu_custom_call.1
= control target key start
LH: loop header
LB: loop body
LE: loop exit
PB: predicated region body
PF: predicated region fallthrough
CT: control target
= control target key end

     0   :  { %s1528_s0 = inlined_call_operand.vmem [shape: bf16[2,32,16], index: 0, kind: input, shape index: {}]   ;;  %s1529_s1 = inlined_call_operand.vmem [shape: bf16[2,4,1,16], index: 1, kind: input, shape index: {}]   ;;  %s1530_s2 = inlined_call_operand.vmem [shape: bf16[2,4,1,16], index: 2, kind: input, shape index: {}]   ;;  %s1531_s3 = inlined_call_operand.vmem [shape: bf16[16,8], index: 3, kind: input, shape index: {}]   ;;  %s1532_s4 = inlined_call_operand.vmem [shape: f32[1,8], index: 4, kind: input, shape index: {}]   ;;  %s1533_s5 = inlined_call_operand.vmem [shape: bf16[24,8], index: 5, kind: input, shape index: {}]   ;;  %s1534_s6 = inlined_call_operand.vmem [shape: f32[1,8], index: 6, kind: input, shape index: {}]   ;;  %s1535_s7 = inlined_call_operand.vmem [shape: bf16[8,32], index: 7, kind: input, shape index: {}]   ;;  %s1536_s8 = inlined_call_operand.vmem [shape: f32[1,32], index: 8, kind: input, shape index: {}]   ;;  %s1537_s9 = inlined_call_operand.vmem [shape: bf16[16,32], index: 9, kind: input, shape index: {}]   ;;  %s1538_s10 = inlined_call_operand.vmem [shape: f32[1,32], index: 10, kind: input, shape index: {}]   ;;  %s1539_s11 = inlined_call_operand.hbm [shape: bf16[2,32,32], index: 11, kind: output, shape index: {}]  }
   0x1   :  { %1543 = sst [smem:[#allocation9_spill]] %s1528_s0 }
   0x2   :  { %1544 = sst [smem:[#allocation10_spill]] %s1531_s3 }
   0x3   :  { %1545 = sst [smem:[#allocation11_spill]] %s1537_s9 }
   0x4   :  { %16 = vsyncpa [#allocation4], 0 }
   0x5   :  { %18 = vsyncpa [#allocation4 + $0x1], 0  ;;  %s1344_s17 = smov 0   ;;  %s1346_s18 = smov 0  }
   0x6   :  { %s1348_s19 = smov 0   ;;  %s1350_s20 = smov 0  }
   0x7   :  { %s1352_s21 = smov 0   ;;  %s1354_s22 = smov 0  }
   0x8   :  { %s1356_s23 = smov 0   ;;  %s1358_s24 = smov 0  }
   0x9 LB: > { %1546 = sst [smem:[#allocation6_spill]] %s1273_s23  ;;  %s1014_s25 = sadd.s32 4294967295, %s1277_s24   ;;  %s1277_s24 = sphi %s1358_s24, %s24_s24   ;;  %s1273_s23 = sphi %s1356_s23, %s1557_s23   ;;  %s1269_s22 = sphi %s1354_s22, %s1562_s22   ;;  %s1265_s21 = sphi %s1352_s21, %s1555_s21   ;;  %s1261_s20 = sphi %s1350_s20, %s1561_s20   ;;  %s1257_s19 = sphi %s1348_s19, %s1560_s19   ;;  %s1253_s18 = sphi %s1346_s18, %s1559_s18   ;;  %s1249_s17 = sphi %s1344_s17, %s1558_s17  }
   0xa   : > { %s1015_s26 = sadd.s32 4294967294, %s1277_s24   ;;  %s33_s27 = sadd.s32 1, %s1269_s22 }
   0xb   : > { %p34_p0 = scmp.ge.s32.totalorder %s33_s27, 4  ;;  %s36_s28 = sadd.s32 1, %s1273_s23 }
   0xc   : > { %p319_p1 = scmp.ne.s32.totalorder %s1257_s19, %s1253_s18  ;;  %p320_p2 = scmp.eq.s32.totalorder %s1014_s25, 7 }
   0xd   : > { %s1564_s27 = smov (%p34_p0, %s33_s27), 0  ;;  %s1566_s28 = smov (!%p34_p0, %s36_s28), %s1273_s23 }
   0xe   : > { %1547 = sst [smem:[#allocation7_spill]] %s1564_s27  ;;  %s305_s29 = ssub.s32 %s1269_s22, %s1564_s27 }
   0xf   : > { %p1395_p3 = por %p320_p2, %p319_p1  ;;  %p38_p4 = scmp.ge.s32.totalorder %s1566_s28, 2 }
  0x10   : > { %p325_p5 = scmp.ne.s32.totalorder %s1253_s18, %s1249_s17  ;;  %p326_p6 = scmp.eq.s32.totalorder %s1015_s26, 7 }
  0x11   : > { %p1020_p7 = scmp.ge.s32.totalorder %s1277_s24, 1  ;;  %s1568_s28 = smov (%p38_p4, %s1566_s28), 0 }
  0x12   : > { %1549 = sst [smem:[#allocation8_spill]] %s1568_s28  ;;  %p1404_p8 = por %p326_p6, %p325_p5 }
  0x13   : > { %p411_p9 = scmp.lt.s32.totalorder %s1277_s24, 9  ;;  %s304_s13 = ssub.s32 %s1273_s23, %s1568_s28 }
  0x14   : > { %s309_s14 = sadd.s32 1, %s1257_s19  ;;  %s306_s15 = sor.u32 %s305_s29, %s304_s13 }
  0x15   : > { %p412_p10 = pnand %p1020_p7, %p411_p9  ;;  %p307_p11 = scmp.eq.s32.totalorder %s306_s15, 0 }
  0x16   : > { %s1551_s3 = sld [smem:[#allocation10_spill]] (!%p412_p10)  ;;  %p474_p12 = scmp.lt.s32.totalorder (!%p412_p10), %s1265_s21, 1 }
  0x17   : > { %s1413_s16 = scalar_select %p307_p11, %s1257_s19, %s309_s14  }
  0x18   : > { %415 = sbr.rel (%p412_p10) target bundleno = 784 (0x310), region = 64  ;;  %s1552_s9 = sld [smem:[#allocation11_spill]] (!%p412_p10) }
  0x19   : > { %p476_p13 = scmp.lt.s32.totalorder (!%p412_p10), %s1261_s20, 3  ;;  %s1024_s27 = sadd.s32 (!%p412_p10), 4294967295, %s1261_s20 }
  0x1a   : > { %s495_s13 = sadd.s32 (!%p412_p10), 1, %s1261_s20  ;;  %p483_p0 = scmp.gt.s32.totalorder (!%p412_p10), %s1024_s27, 0 }
  0x1b   : > { %p1025_p1 = scmp.lt.s32.totalorder (!%p412_p10), %s1024_s27, 3  ;;  %p1429_p2 = scmp.lt.s32.totalorder (!%p412_p10), %s495_s13, 3 }
  0x1c   : > { %s1554_s0 = sld [smem:[#allocation9_spill]] (!%p412_p10)  ;;  %p627_p4 = scmp.eq.s32.totalorder (!%p412_p10), %s1261_s20, 0 }
  0x1d   : > { %v1181_v0 = vld [vmem:[%s1551_s3] sm:$0xff]   ;;  %v1279_v1 = vmov 0.0   ;;  %vm1280_vm0 = vmmov 0   ;;  %s475_s14 = scalar_select %p474_p12, %s1265_s21, 1  ;;  %vm528_vm1 = vcmask 130048   ;;  %v575_v6 = vlaneseq }
  0x1e   : > { %1074 = vmatprep.subr.bf16.mxu1 %v1279_v1  ;;  %1068 = vmatprep.subr.bf16.mxu0 %v1279_v1  ;;  %v1182_v2 = vld [vmem:[%s1552_s9] sm:$0xff]   ;;  %s477_s15 = scalar_select %p476_p13, %s1261_s20, 3  ;;  %v1183_v8 = vld [vmem:[%s1533_s5 + $0x8] ss:$0 sps:$4 sm:$0xff]   ;;  %vm782_vm2 = vcmask 1043456   ;;  %vm572_vm3 = vcmask 261120  }
  0x1f   : > { %1075 = vmatpush3.bf16.msra.mxu1 %v1181_v0  ;;  %1070 = vmatprep.mubr.msk.bf16.mxu0 %vm1280_vm0, %v1279_v1  ;;  %s1022_s25 = sshll.u32 %s475_s14, 2  ;;  %s1570_s27 = smov (!%p483_p0, %s1024_s27), 0  ;;  %v576_v7 = vshrl.u32 %v575_v6, 7  ;;  %v512_v10 = vld [vmem:[%s1532_s4] sm:$0x1]  ;;  %v784_v11 = vsel %vm782_vm2, %v1183_v8, 0 }
  0x20   : > { %1069 = vmatpush3.bf16.msra.mxu0 %v1182_v2  ;;  %1076 = vmatprep.mubr.msk.bf16.mxu1 %vm1280_vm0, %v1279_v1  ;;  %s479_s3 = sadd.s32 %s1022_s25, %s477_s15  ;;  %s1572_s13 = smov (!%p1429_p2, %s495_s13), 3  ;;  %v1035_v13 = vld [vmem:[%s1538_s10] ss:$0 sm:$0xff]  ;;  %vm755_vm8 = vcmask 64512   ;;  %vm778_vm9 = vcmask 195584   ;;  %vm888_vm10 = vcmask 257024  }
  0x21   : > { %1086 = vmatprep.subr.bf16.mxu1 %v1279_v1  ;;  %1080 = vmatprep.subr.bf16.mxu0 %v1279_v1  ;;  %s1023_s26 = sshll.u32 %s479_s3, 2  ;;  %s1574_s27 = smov (!%p1025_p1, %s1570_s27), 3  ;;  %v577_v9 = vsub.s32 0, %v576_v7  ;;  %v1184_v20 = vld [vmem:[%s1533_s5] sm:$0xff]   ;;  %vm738_vm6 = vcmp.eq.s32.totalorder %v576_v7, 7  ;;  %vm729_vm7 = vcmp.eq.s32.totalorder %v576_v7, 0 }
  0x22   : > { %s481_s23 = scalar_lea.vmem %s1554_s0, %s1023_s26  ;;  %s1576_s13 = smov (!%p1429_p2, %s1572_s13), 3  ;;  %v829_v28 = vld [vmem:[%s1535_s7] sm:$0xf] }
  0x23   : > { %v509_v3 = vld [vmem:[%s481_s23] sm:$0xf]  ;;  %s490_s3 = sadd.s32 %s1574_s27, %s1022_s25  ;;  %s503_s14 = sadd.s32 %s1022_s25, %s1576_s13  ;;  %v578_v12 = vrot.slane %v512_v10, %v577_v9  ;;  %v841_v31 = vsel %vm782_vm2, %v829_v28, 0 }
  0x24   : > { %1071 = vmatmul.mubr.msk.bf16.vlgmr.msra.gmra.mxu0 %vm528_vm1, %v509_v3  ;;  %1077 = vmatmul.mubr.msk.bf16.vlgmr.msra.gmra.mxu1 %vm528_vm1, %v509_v3  ;;  %s491_s28 = scalar_lea.vmem %s1529_s1, %s490_s3  ;;  %s504_s0 = scalar_lea.vmem %s1530_s2, %s503_s14  ;;  %v1042_v55 = vld [vmem:[%s1534_s6] ss:$0 sm:$0xff] }
  0x25   : > { %1087 = vmatpush3.bf16.msra.mxu1 %v1181_v0  ;;  %1081 = vmatpush3.bf16.msra.mxu0 %v1181_v0  ;;  %v628_v4 = vld [vmem:[%s491_s28] sm:$0x1]  ;;  %p677_p5 = scmp.eq.s32.totalorder %s1261_s20, 3  ;;  %s1281_s15 = smov 8  }
  0x26   : > { %1082 = vmatprep.mubr.msk.bf16.mxu0 %vm1280_vm0, %v1279_v1  ;;  %1088 = vmatprep.mubr.msk.bf16.mxu1 %vm1280_vm0, %v1279_v1  ;;  %v678_v5 = vld [vmem:[%s504_s0] sm:$0x1]  ;;  %s673_s9 = scalar_select %p627_p4, 1, 0 }
  0x27   : > { %1092 = vmatprep.subr.bf16.mxu0 %v1279_v1  ;;  %1100 = vmatprep.subr.bf16.mxu1 %v1279_v1  ;;  %s723_s14 = scalar_select %p677_p5, 1, 0  ;;  %v1046_v63 = vld [vmem:[%s1536_s8] ss:$0 sm:$0xff] }
  0x28   : > { %v674_v26 = vstv %s673_s9  ;;  %s1282_s13 = smov 16   ;;  %s471_s9 = sand.u32 1, %s1253_s18  }
  0x29   : > { %v724_v27 = vstv %s723_s14  ;;  %vm675_vm4 = vcmp.eq.s32.totalorder %v674_v26, 1  ;;  %s1021_s23 = sshll.u32 %s471_s9, 2  ;;  %s1049_s28 = sshll.u32 %s1265_s21, 2 }
  0x2a   : > { %vm725_vm5 = vcmp.eq.s32.totalorder %v724_v27, 1  ;;  %s902_s14 = sadd.s32 %s1261_s20, %s1049_s28  ;;  %s473_s26 = scalar_lea.vmem [#allocation3], %s1021_s23 }
  0x2b   : > { %s906_s27 = sshll.u32 %s473_s26, 4  ;;  %s891_s29 = scalar_lea.sflag [#allocation4], %s471_s9  ;;  %s907_s27 = int_to_ptr.vmem [resolvable:$true] %s906_s27 }
  0x2c   : > { %1083 = vmatmul.mubr.msk.bf16.vlgmr.msra.gmra.mxu0 %vm528_vm1, %v628_v4  ;;  %1089 = vmatmul.mubr.msk.bf16.vlgmr.msra.gmra.mxu1 %vm528_vm1, %v678_v5  ;;  %s1185_s3 = scalar_lea.vmem %s907_s27, 64  ;;  %s1283_s20 = smov [#allocation3]  }
  0x2d   : > { %1096 = vmatprep.mubr.msk.bf16.mxu0 %vm1280_vm0, %v1279_v1  ;;  %1102 = vmatprep.mubr.msk.bf16.mxu1 %vm1280_vm0, %v1279_v1  ;;  %p1186_p6 = scmp.ne.s32.totalorder %s907_s27, %s1185_s3  ;;  %s1189_s21 = sshll.u32 %s1283_s20, 4  ;;  %s1190_s21 = int_to_ptr.vmem [resolvable:$false] %s1189_s21 }
  0x2e   : > { %1093 = vmatpush3.bf16.msra.mxu0 %v784_v11  ;;  %1101 = vmatpush3.bf16.msra.mxu1 %v841_v31  ;;  %s1191_s23 = scalar_lea.vmem %s1190_s21, 128  ;;  %p1192_p10 = scmp.lt.s32.totalorder %s907_s27, %s1190_s21 }
  0x2f   : > { %1094 = vmatprep.subr.bf16.mxu0 %v1279_v1  ;;  %p1187_p7 = pnand %p1186_p6, %p1395_p3  ;;  %p1193_p11 = scmp.lt.s32.totalorder %s1191_s23, %s1185_s3 }
  0x31   : > { %p1188_p9 = pneg %p1187_p7  ;;  %p1194_p12 = por %p1193_p11, %p1192_p10 }
  0x32   : > { %1095 = vmatpush3.bf16.msra.mxu0 %v1184_v20 }
  0x33   : > { %p1195_p13 = pnand %p1194_p12, %p1188_p9 }
  0xe4   : > { %v566_v14 = vpop.f32.mrf.mxu0  ;;  %v620_v15 = vpop.f32.mrf.mxu1 }
  0xe5   : > { %v567_v16 = vadd.f32 %v1035_v13, %v566_v14  ;;  %v621_v17 = vadd.f32 %v620_v15, %v578_v12 }
  0xe6   : > { %v1072_v18 = vpop.f32.mrf.mxu0  ;;  %v1078_v19 = vpop.f32.mrf.mxu1 }
  0xe7   : > { %573 = vst.msk [vmem:[#allocation2] sm:$0xff] %vm572_vm3, %v567_v16  ;;  %v626_v21 = vmax.f32 %v621_v17, 0.0 }
  0xe8   : > { %v569_v22 = vpop.f32.mrf.mxu0  ;;  %v623_v23 = vpop.f32.mrf.mxu1 }
  0xe9   : > { %748 = vrot.lane.b32.xlu0 %v626_v21, %s1281_s15  ;;  %v730_v42 = vrot.slane %v626_v21, 7  ;;  %v739_v43 = vrot.slane %v626_v21, 1  ;;  %s1050_s15 = sshll.u32 %s902_s14, 6 }
  0xea   : > { %v1073_v24 = vpop.f32.mrf.mxu0  ;;  %v1079_v25 = vpop.f32.mrf.mxu1  ;;  %s904_s0 = scalar_lea.hbm %s1539_s11, %s1050_s15 }
  0xec   : > { %v666_v29 = vpop.f32.mrf.mxu0  ;;  %v716_v30 = vpop.f32.mrf.mxu1 }
  0xed   : > { %v667_v32 = vadd.f32 %v666_v29, %v512_v10  ;;  %v717_v33 = vadd.f32 %v716_v30, %v512_v10 }
  0xee   : > { %v1090_v34 = vpop.f32.mrf.mxu1  ;;  %v1084_v35 = vpop.f32.mrf.mxu0  ;;  %v827_v2 = vld [vmem:[#allocation2] sm:$0xff] }
  0xef   : > { %v672_v36 = vmax.f32 %v667_v32, 0.0  ;;  %v722_v37 = vmax.f32 %v717_v33, 0.0 }
  0xf0   : > { %v719_v38 = vpop.f32.mrf.mxu1  ;;  %v669_v39 = vpop.f32.mrf.mxu0 }
  0xf1   : > { %v676_v40 = vsel %vm675_vm4, 0.0, %v672_v36  ;;  %v726_v41 = vsel %vm725_vm5, 0.0, %v722_v37 }
  0xf2   : > { %v736_v44 = vrot.slane %v676_v40, %v577_v9  ;;  %v745_v45 = vrot.slane %v726_v41, %v577_v9  ;;  %v1091_v46 = vpop.f32.mrf.mxu1  ;;  %v1085_v47 = vpop.f32.mrf.mxu0 }
  0xf4   : > { %v746_v48 = vsel %vm738_vm6, %v745_v45, %v739_v43  ;;  %v737_v49 = vsel %vm729_vm7, %v736_v44, %v730_v42 }
  0xf5   : > { %752 = vrot.lane.b32.xlu0 %v746_v48, %s1282_s13 }
 0x15b   : > { %v749_v50 = vpop.permute.xlu0 %748 }
 0x15c   : > { %v756_v51 = vsel %vm755_vm8, %v737_v49, %v749_v50 }
 0x167   : > { %v753_v52 = vpop.permute.xlu0 %752 }
 0x168   : > { %v757_v53 = vsel %vm528_vm1, %v756_v51, %v753_v52 }
 0x169   : > { %v758_v54 = vpack.c.bf16 %v757_v53, %v757_v53 }
 0x16b   : > { %1097 = vmatmul.mubr.msk.bf16.vlgmr.msra.gmra.mxu0 %vm778_vm9, %v758_v54 }
 0x22b   : > { %v820_v56 = vpop.f32.mrf.mxu0 }
 0x22c   : > { %v821_v57 = vadd.f32 %v1042_v55, %v820_v56 }
 0x22d   : > { %v1098_v58 = vpop.f32.mrf.mxu0 }
 0x22e   : > { %v826_v59 = vmax.f32 %v821_v57, 0.0 }
 0x22f   : > { %v823_v60 = vpop.f32.mrf.mxu0 }
 0x230   : > { %v828_v61 = vpack.c.bf16 %v826_v59, %v826_v59 }
 0x231   : > { %v1099_v62 = vpop.f32.mrf.mxu0 }
 0x232   : > { %1103 = vmatmul.mubr.msk.bf16.vlgmr.msra.gmra.mxu1 %vm755_vm8, %v828_v61 }
 0x2f2   : > { %v877_v0 = vpop.f32.mrf.mxu1 }
 0x2f3   : > { %v878_v1 = vadd.f32 %v1046_v63, %v877_v0 }
 0x2f4   : > { %v1104_v3 = vpop.f32.mrf.mxu1 }
 0x2f5   : > { %v883_v4 = vadd.f32 %v878_v1, %v827_v2 }
 0x2f6   : > { %v880_v5 = vpop.f32.mrf.mxu1 }
 0x2f7   : > { %884 = vst.msk [vmem:[#allocation2] sm:$0xff] %vm572_vm3, %v883_v4 }
 0x2f8   : > { %v1105_v6 = vpop.f32.mrf.mxu1 }
 0x2fe   : > { %v885_v7 = vld [vmem:[#allocation2] sm:$0xff] }
 0x2ff   : > { %v886_v8 = vmax.f32 %v885_v7, 0.0 }
 0x301   : > { %v887_v9 = vpack.c.bf16 %v886_v8, %v886_v8 }
 0x303   : > { %889 = vst.msk [vmem:[%s473_s26] sm:$0xf] %vm888_vm10, %v887_v9 }
 0x304   : > { %1198 = shalt.err (!%p1195_p13)
}
 0x305   : > { %s1199_s28 = scalar_lea.hbm %s904_s0, 64  ;;  %s1203_s15 = scalar_lea.hbm %s1539_s11, 512 }
 0x306   : > { %p1200_p0 = scmp.ne.s32.totalorder %s904_s0, %s1199_s28  ;;  %p1204_p4 = scmp.lt.s32.totalorder %s904_s0, %s1539_s11 }
 0x307   : > { %p1205_p5 = scmp.lt.s32.totalorder %s1203_s15, %s1199_s28 }
 0x308   : > { %p1201_p1 = pnand %p1200_p0, %p1395_p3 }
 0x309   : > { %p1206_p6 = por %p1205_p5, %p1204_p4 }
 0x30a   : > { %p1202_p2 = pneg %p1201_p1 }
 0x30c   : > { %p1207_p7 = pnand %p1206_p6, %p1202_p2 }
 0x30e   : > { %1210 = shalt.err (!%p1207_p7)
}
 0x30f   : > { %1106 = dma.vmem_to_hbm [thread:$0]  (%p1395_p3), %s907_s27, 64, %s904_s0, %s891_s29  }
 0x310 PF: > { %p1112_p9 = scmp.ge.s32.totalorder %s1277_s24, 2  ;;  %s918_s25 = sand.u32 1, %s1249_s17  }
 0x311   : > { %s919_s3 = scalar_lea.sflag [#allocation4], %s918_s25 }
 0x312   : > { %p1109_p10 = pnand %p1112_p9, %p1404_p8 }
 0x314   : > { %p1110_p11 = pneg %p1109_p10 }
 0x316   : > { %1244 = dma.done.wait (%p1110_p11), %s919_s3, 64  }
 0x317   : > { %1246 = vsyncadd (%p1110_p11), %s919_s3, 4294967232  ;;  %s24_s24 = sadd.s32 1, %s1277_s24   ;;  %s1555_s21 = sld [smem:[#allocation6_spill]] }
 0x318   : > { %p21_p12 = scmp.ge.s32.totalorder %s24_s24, 10   ;;  %s1556_s30 = sld [smem:[#allocation7_spill]] }
 0x319   : > { %s1557_s23 = sld [smem:[#allocation8_spill]]  ;;  %s1558_s17 = smov %s1253_s18 }
 0x31a   : > { %s1559_s18 = smov %s1257_s19  ;;  %s1560_s19 = smov %s1413_s16 }
 0x31b   : > { %s1561_s20 = smov %s1269_s22  ;;  %23 = sbr.rel (!%p21_p12) target bundleno = 9 (0x9), region = 105 }
 0x31e   : > { %s1562_s22 = smov %s1556_s30 }
 0x320   :  { %924 = vsyncpa [#allocation4], 1 }
 0x321   :  { %926 = vsyncpa [#allocation4 + $0x1], 1 }

</bundles_post_ra>
